<compile_context>
chip_gen: v7x
topology: tpu7x:2x2x1
jax: 0.10.0
libtpu: 0.0.40
codegen_flags: <defaults>
</compile_context>

<pallas_src>
import jax
import jax.numpy as jnp
from jax.experimental import pallas as pl
from jax.experimental.pallas import tpu as pltpu

_IN, _H1, _H2, _OUT = 8, 6, 4, 1


def _mlp_kernel(xT_ref, w1_ref, b1_ref, w2_ref, b2_ref, w3_ref, b3_ref, o_ref):
    # xT_ref : [8, TN] f32 in VMEM  (features on sublanes, batch on lanes)
    # w*_ref : (out, in) f32 in SMEM ; b*_ref : (out,) f32 in SMEM
    xT = xT_ref[...]
    rows = [xT[i:i + 1, :] for i in range(_IN)]          # each [1, TN]

    def layer(rows_in, w_ref, b_ref, n_in, n_out):
        rows_out = []
        for j in range(n_out):
            # Bias folded into accumulator init; weights are SMEM scalars
            # broadcast across the 128-lane batch axis (pure VPU FMAs).
            acc = rows_in[0] * w_ref[j, 0] + b_ref[j]
            for i in range(1, n_in):
                acc = acc + rows_in[i] * w_ref[j, i]
            # sigmoid(z) = 1 / (1 + exp(-z)) : exp + approx reciprocal -> EUP
            rows_out.append(pl.reciprocal(1.0 + jnp.exp(-acc), approx=True))
        return rows_out

    h1 = layer(rows, w1_ref, b1_ref, _IN, _H1)            # 6 x [1, TN]
    h2 = layer(h1, w2_ref, b2_ref, _H1, _H2)              # 4 x [1, TN]
    h3 = layer(h2, w3_ref, b3_ref, _H2, _OUT)             # 1 x [1, TN]
    o_ref[...] = h3[0]                                    # lane-dense [1, TN] store


def mlp_forward(x, w1, b1, w2, b2, w3, b3, *, tile_n=512):
    """x: [N, 8] f32 -> [N, 1] f32 (PyTorch Model.forward semantics)."""
    n = x.shape[0]
    xT = x.T.astype(jnp.float32)                          # [8, N] layout plumbing only
    n_pad = max(tile_n, ((n + tile_n - 1) // tile_n) * tile_n)
    if n_pad != n:
        xT = jnp.pad(xT, ((0, 0), (0, n_pad - n)))
    grid = (n_pad // tile_n,)

    smem = pl.BlockSpec(memory_space=pltpu.MemorySpace.SMEM)

    oT = pl.pallas_call(
        _mlp_kernel,
        out_shape=jax.ShapeDtypeStruct((_OUT, n_pad), jnp.float32),
        grid=grid,
        in_specs=[
            pl.BlockSpec((_IN, tile_n), lambda i: (0, i)),   # batch-tiled activations
            smem, smem,                                      # w1, b1 (SMEM-resident)
            smem, smem,                                      # w2, b2
            smem, smem,                                      # w3, b3
        ],
        out_specs=pl.BlockSpec((_OUT, tile_n), lambda i: (0, i)),
        compiler_params=pltpu.CompilerParams(
            dimension_semantics=("parallel",),               # megacore shard on v7x
        ),
    )(xT, w1, b1, w2, b2, w3, b3)

    return oT[:, :n].T                                       # back to [N, 1]


def init_params(key):
    # Deterministic init mimicking nn.Linear's uniform(-1/sqrt(fan_in), ...).
    # Weights stored PyTorch-style: (out_features, in_features); bias: (out,).
    def linear(k, fan_in, fan_out):
        kw, kb = jax.random.split(k)
        bound = 1.0 / jnp.sqrt(jnp.float32(fan_in))
        w = jax.random.uniform(kw, (fan_out, fan_in), jnp.float32, -bound, bound)
        b = jax.random.uniform(kb, (fan_out,), jnp.float32, -bound, bound)
        return w, b

    k1, k2, k3 = jax.random.split(key, 3)
    w1, b1 = linear(k1, _IN, _H1)
    w2, b2 = linear(k2, _H1, _H2)
    w3, b3 = linear(k3, _H2, _OUT)
    return w1, b1, w2, b2, w3, b3


if __name__ == "__main__":
    key = jax.random.PRNGKey(0)
    k_params, k_x = jax.random.split(key)
    w1, b1, w2, b2, w3, b3 = init_params(k_params)

    batch = 1000  # deliberately not a tile multiple: exercises padding path
    x = jax.random.normal(k_x, (batch, _IN), jnp.float32)

    out = jax.block_until_ready(mlp_forward(x, w1, b1, w2, b2, w3, b3))

    # Pure-JAX reference (PyTorch semantics: sigmoid(x @ W.T + b) per layer)
    ref = x
    for w, b in ((w1, b1), (w2, b2), (w3, b3)):
        ref = jax.nn.sigmoid(ref @ w.T + b)

    assert out.shape == (batch, 1)
    # Tolerance accounts for the EUP approximate reciprocal in the sigmoid.
    assert jnp.allclose(out, ref, atol=2e-3), "mismatch vs reference"

    print("KERNEL_OK")
</pallas_src>

<mosaic_0001>
module attributes {stable_mosaic.version = 11 : i64} {
  func.func @_mlp_kernel(%arg0: i32, %arg1: memref<8x512xf32, #tpu.memory_space<vmem>>, %arg2: memref<6x8xf32, #tpu.memory_space<smem>>, %arg3: memref<6xf32, #tpu.memory_space<smem>>, %arg4: memref<4x6xf32, #tpu.memory_space<smem>>, %arg5: memref<4xf32, #tpu.memory_space<smem>>, %arg6: memref<1x4xf32, #tpu.memory_space<smem>>, %arg7: memref<1xf32, #tpu.memory_space<smem>>, %arg8: memref<1x512xf32, #tpu.memory_space<vmem>>) attributes {dimension_semantics = [#tpu.dimension_semantics<parallel>], iteration_bounds = array<i64: 2>, scalar_prefetch = 0 : i64, scratch_operands = 0 : i64, tpu.core_type = #tpu.core_type<tc>, window_params = [{transform_indices = @transform_0, window_bounds = array<i64: 8, 512>}, {transform_indices = @transform_1, window_bounds = array<i64: 6, 8>}, {transform_indices = @transform_2, window_bounds = array<i64: 6>}, {transform_indices = @transform_3, window_bounds = array<i64: 4, 6>}, {transform_indices = @transform_4, window_bounds = array<i64: 4>}, {transform_indices = @transform_5, window_bounds = array<i64: 1, 4>}, {transform_indices = @transform_6, window_bounds = array<i64: 1>}, {transform_indices = @transform_7, window_bounds = array<i64: 1, 512>}]} {
    %c0 = arith.constant 0 : index
    %c0_0 = arith.constant 0 : index
    %0 = vector.load %arg1[%c0, %c0_0] : memref<8x512xf32, #tpu.memory_space<vmem>>, vector<8x512xf32>
    %1 = vector.extract_strided_slice %0 {offsets = [0, 0], sizes = [1, 512], strides = [1, 1]} : vector<8x512xf32> to vector<1x512xf32>
    %2 = vector.extract_strided_slice %0 {offsets = [1, 0], sizes = [1, 512], strides = [1, 1]} : vector<8x512xf32> to vector<1x512xf32>
    %3 = vector.extract_strided_slice %0 {offsets = [2, 0], sizes = [1, 512], strides = [1, 1]} : vector<8x512xf32> to vector<1x512xf32>
    %4 = vector.extract_strided_slice %0 {offsets = [3, 0], sizes = [1, 512], strides = [1, 1]} : vector<8x512xf32> to vector<1x512xf32>
    %5 = vector.extract_strided_slice %0 {offsets = [4, 0], sizes = [1, 512], strides = [1, 1]} : vector<8x512xf32> to vector<1x512xf32>
    %6 = vector.extract_strided_slice %0 {offsets = [5, 0], sizes = [1, 512], strides = [1, 1]} : vector<8x512xf32> to vector<1x512xf32>
    %7 = vector.extract_strided_slice %0 {offsets = [6, 0], sizes = [1, 512], strides = [1, 1]} : vector<8x512xf32> to vector<1x512xf32>
    %8 = vector.extract_strided_slice %0 {offsets = [7, 0], sizes = [1, 512], strides = [1, 1]} : vector<8x512xf32> to vector<1x512xf32>
    %c0_1 = arith.constant 0 : index
    %c0_2 = arith.constant 0 : index
    %9 = memref.load %arg2[%c0_1, %c0_2] : memref<6x8xf32, #tpu.memory_space<smem>>
    %10 = vector.broadcast %9 : f32 to vector<1x512xf32>
    %11 = arith.mulf %1, %10 : vector<1x512xf32>
    %c0_3 = arith.constant 0 : index
    %12 = memref.load %arg3[%c0_3] : memref<6xf32, #tpu.memory_space<smem>>
    %13 = vector.broadcast %12 : f32 to vector<1x512xf32>
    %14 = arith.addf %11, %13 : vector<1x512xf32>
    %c0_4 = arith.constant 0 : index
    %c1 = arith.constant 1 : index
    %15 = memref.load %arg2[%c0_4, %c1] : memref<6x8xf32, #tpu.memory_space<smem>>
    %16 = vector.broadcast %15 : f32 to vector<1x512xf32>
    %17 = arith.mulf %2, %16 : vector<1x512xf32>
    %18 = arith.addf %14, %17 : vector<1x512xf32>
    %c0_5 = arith.constant 0 : index
    %c2 = arith.constant 2 : index
    %19 = memref.load %arg2[%c0_5, %c2] : memref<6x8xf32, #tpu.memory_space<smem>>
    %20 = vector.broadcast %19 : f32 to vector<1x512xf32>
    %21 = arith.mulf %3, %20 : vector<1x512xf32>
    %22 = arith.addf %18, %21 : vector<1x512xf32>
    %c0_6 = arith.constant 0 : index
    %c3 = arith.constant 3 : index
    %23 = memref.load %arg2[%c0_6, %c3] : memref<6x8xf32, #tpu.memory_space<smem>>
    %24 = vector.broadcast %23 : f32 to vector<1x512xf32>
    %25 = arith.mulf %4, %24 : vector<1x512xf32>
    %26 = arith.addf %22, %25 : vector<1x512xf32>
    %c0_7 = arith.constant 0 : index
    %c4 = arith.constant 4 : index
    %27 = memref.load %arg2[%c0_7, %c4] : memref<6x8xf32, #tpu.memory_space<smem>>
    %28 = vector.broadcast %27 : f32 to vector<1x512xf32>
    %29 = arith.mulf %5, %28 : vector<1x512xf32>
    %30 = arith.addf %26, %29 : vector<1x512xf32>
    %c0_8 = arith.constant 0 : index
    %c5 = arith.constant 5 : index
    %31 = memref.load %arg2[%c0_8, %c5] : memref<6x8xf32, #tpu.memory_space<smem>>
    %32 = vector.broadcast %31 : f32 to vector<1x512xf32>
    %33 = arith.mulf %6, %32 : vector<1x512xf32>
    %34 = arith.addf %30, %33 : vector<1x512xf32>
    %c0_9 = arith.constant 0 : index
    %c6 = arith.constant 6 : index
    %35 = memref.load %arg2[%c0_9, %c6] : memref<6x8xf32, #tpu.memory_space<smem>>
    %36 = vector.broadcast %35 : f32 to vector<1x512xf32>
    %37 = arith.mulf %7, %36 : vector<1x512xf32>
    %38 = arith.addf %34, %37 : vector<1x512xf32>
    %c0_10 = arith.constant 0 : index
    %c7 = arith.constant 7 : index
    %39 = memref.load %arg2[%c0_10, %c7] : memref<6x8xf32, #tpu.memory_space<smem>>
    %40 = vector.broadcast %39 : f32 to vector<1x512xf32>
    %41 = arith.mulf %8, %40 : vector<1x512xf32>
    %42 = arith.addf %38, %41 : vector<1x512xf32>
    %cst = arith.constant 0.000000e+00 : f32
    %43 = vector.broadcast %cst : f32 to vector<1x512xf32>
    %44 = arith.subf %43, %42 : vector<1x512xf32>
    %45 = math.exp %44 : vector<1x512xf32>
    %cst_11 = arith.constant 1.000000e+00 : f32
    %46 = vector.broadcast %cst_11 : f32 to vector<1x512xf32>
    %47 = arith.addf %46, %45 : vector<1x512xf32>
    %48 = tpu.reciprocal %47 {approx = true} : vector<1x512xf32> -> vector<1x512xf32>
    %c1_12 = arith.constant 1 : index
    %c0_13 = arith.constant 0 : index
    %49 = memref.load %arg2[%c1_12, %c0_13] : memref<6x8xf32, #tpu.memory_space<smem>>
    %50 = vector.broadcast %49 : f32 to vector<1x512xf32>
    %51 = arith.mulf %1, %50 : vector<1x512xf32>
    %c1_14 = arith.constant 1 : index
    %52 = memref.load %arg3[%c1_14] : memref<6xf32, #tpu.memory_space<smem>>
    %53 = vector.broadcast %52 : f32 to vector<1x512xf32>
    %54 = arith.addf %51, %53 : vector<1x512xf32>
    %c1_15 = arith.constant 1 : index
    %c1_16 = arith.constant 1 : index
    %55 = memref.load %arg2[%c1_15, %c1_16] : memref<6x8xf32, #tpu.memory_space<smem>>
    %56 = vector.broadcast %55 : f32 to vector<1x512xf32>
    %57 = arith.mulf %2, %56 : vector<1x512xf32>
    %58 = arith.addf %54, %57 : vector<1x512xf32>
    %c1_17 = arith.constant 1 : index
    %c2_18 = arith.constant 2 : index
    %59 = memref.load %arg2[%c1_17, %c2_18] : memref<6x8xf32, #tpu.memory_space<smem>>
    %60 = vector.broadcast %59 : f32 to vector<1x512xf32>
    %61 = arith.mulf %3, %60 : vector<1x512xf32>
    %62 = arith.addf %58, %61 : vector<1x512xf32>
    %c1_19 = arith.constant 1 : index
    %c3_20 = arith.constant 3 : index
    %63 = memref.load %arg2[%c1_19, %c3_20] : memref<6x8xf32, #tpu.memory_space<smem>>
    %64 = vector.broadcast %63 : f32 to vector<1x512xf32>
    %65 = arith.mulf %4, %64 : vector<1x512xf32>
    %66 = arith.addf %62, %65 : vector<1x512xf32>
    %c1_21 = arith.constant 1 : index
    %c4_22 = arith.constant 4 : index
    %67 = memref.load %arg2[%c1_21, %c4_22] : memref<6x8xf32, #tpu.memory_space<smem>>
    %68 = vector.broadcast %67 : f32 to vector<1x512xf32>
    %69 = arith.mulf %5, %68 : vector<1x512xf32>
    %70 = arith.addf %66, %69 : vector<1x512xf32>
    %c1_23 = arith.constant 1 : index
    %c5_24 = arith.constant 5 : index
    %71 = memref.load %arg2[%c1_23, %c5_24] : memref<6x8xf32, #tpu.memory_space<smem>>
    %72 = vector.broadcast %71 : f32 to vector<1x512xf32>
    %73 = arith.mulf %6, %72 : vector<1x512xf32>
    %74 = arith.addf %70, %73 : vector<1x512xf32>
    %c1_25 = arith.constant 1 : index
    %c6_26 = arith.constant 6 : index
    %75 = memref.load %arg2[%c1_25, %c6_26] : memref<6x8xf32, #tpu.memory_space<smem>>
    %76 = vector.broadcast %75 : f32 to vector<1x512xf32>
    %77 = arith.mulf %7, %76 : vector<1x512xf32>
    %78 = arith.addf %74, %77 : vector<1x512xf32>
    %c1_27 = arith.constant 1 : index
    %c7_28 = arith.constant 7 : index
    %79 = memref.load %arg2[%c1_27, %c7_28] : memref<6x8xf32, #tpu.memory_space<smem>>
    %80 = vector.broadcast %79 : f32 to vector<1x512xf32>
    %81 = arith.mulf %8, %80 : vector<1x512xf32>
    %82 = arith.addf %78, %81 : vector<1x512xf32>
    %cst_29 = arith.constant 0.000000e+00 : f32
    %83 = vector.broadcast %cst_29 : f32 to vector<1x512xf32>
    %84 = arith.subf %83, %82 : vector<1x512xf32>
    %85 = math.exp %84 : vector<1x512xf32>
    %cst_30 = arith.constant 1.000000e+00 : f32
    %86 = vector.broadcast %cst_30 : f32 to vector<1x512xf32>
    %87 = arith.addf %86, %85 : vector<1x512xf32>
    %88 = tpu.reciprocal %87 {approx = true} : vector<1x512xf32> -> vector<1x512xf32>
    %c2_31 = arith.constant 2 : index
    %c0_32 = arith.constant 0 : index
    %89 = memref.load %arg2[%c2_31, %c0_32] : memref<6x8xf32, #tpu.memory_space<smem>>
    %90 = vector.broadcast %89 : f32 to vector<1x512xf32>
    %91 = arith.mulf %1, %90 : vector<1x512xf32>
    %c2_33 = arith.constant 2 : index
    %92 = memref.load %arg3[%c2_33] : memref<6xf32, #tpu.memory_space<smem>>
    %93 = vector.broadcast %92 : f32 to vector<1x512xf32>
    %94 = arith.addf %91, %93 : vector<1x512xf32>
    %c2_34 = arith.constant 2 : index
    %c1_35 = arith.constant 1 : index
    %95 = memref.load %arg2[%c2_34, %c1_35] : memref<6x8xf32, #tpu.memory_space<smem>>
    %96 = vector.broadcast %95 : f32 to vector<1x512xf32>
    %97 = arith.mulf %2, %96 : vector<1x512xf32>
    %98 = arith.addf %94, %97 : vector<1x512xf32>
    %c2_36 = arith.constant 2 : index
    %c2_37 = arith.constant 2 : index
    %99 = memref.load %arg2[%c2_36, %c2_37] : memref<6x8xf32, #tpu.memory_space<smem>>
    %100 = vector.broadcast %99 : f32 to vector<1x512xf32>
    %101 = arith.mulf %3, %100 : vector<1x512xf32>
    %102 = arith.addf %98, %101 : vector<1x512xf32>
    %c2_38 = arith.constant 2 : index
    %c3_39 = arith.constant 3 : index
    %103 = memref.load %arg2[%c2_38, %c3_39] : memref<6x8xf32, #tpu.memory_space<smem>>
    %104 = vector.broadcast %103 : f32 to vector<1x512xf32>
    %105 = arith.mulf %4, %104 : vector<1x512xf32>
    %106 = arith.addf %102, %105 : vector<1x512xf32>
    %c2_40 = arith.constant 2 : index
    %c4_41 = arith.constant 4 : index
    %107 = memref.load %arg2[%c2_40, %c4_41] : memref<6x8xf32, #tpu.memory_space<smem>>
    %108 = vector.broadcast %107 : f32 to vector<1x512xf32>
    %109 = arith.mulf %5, %108 : vector<1x512xf32>
    %110 = arith.addf %106, %109 : vector<1x512xf32>
    %c2_42 = arith.constant 2 : index
    %c5_43 = arith.constant 5 : index
    %111 = memref.load %arg2[%c2_42, %c5_43] : memref<6x8xf32, #tpu.memory_space<smem>>
    %112 = vector.broadcast %111 : f32 to vector<1x512xf32>
    %113 = arith.mulf %6, %112 : vector<1x512xf32>
    %114 = arith.addf %110, %113 : vector<1x512xf32>
    %c2_44 = arith.constant 2 : index
    %c6_45 = arith.constant 6 : index
    %115 = memref.load %arg2[%c2_44, %c6_45] : memref<6x8xf32, #tpu.memory_space<smem>>
    %116 = vector.broadcast %115 : f32 to vector<1x512xf32>
    %117 = arith.mulf %7, %116 : vector<1x512xf32>
    %118 = arith.addf %114, %117 : vector<1x512xf32>
    %c2_46 = arith.constant 2 : index
    %c7_47 = arith.constant 7 : index
    %119 = memref.load %arg2[%c2_46, %c7_47] : memref<6x8xf32, #tpu.memory_space<smem>>
    %120 = vector.broadcast %119 : f32 to vector<1x512xf32>
    %121 = arith.mulf %8, %120 : vector<1x512xf32>
    %122 = arith.addf %118, %121 : vector<1x512xf32>
    %cst_48 = arith.constant 0.000000e+00 : f32
    %123 = vector.broadcast %cst_48 : f32 to vector<1x512xf32>
    %124 = arith.subf %123, %122 : vector<1x512xf32>
    %125 = math.exp %124 : vector<1x512xf32>
    %cst_49 = arith.constant 1.000000e+00 : f32
    %126 = vector.broadcast %cst_49 : f32 to vector<1x512xf32>
    %127 = arith.addf %126, %125 : vector<1x512xf32>
    %128 = tpu.reciprocal %127 {approx = true} : vector<1x512xf32> -> vector<1x512xf32>
    %c3_50 = arith.constant 3 : index
    %c0_51 = arith.constant 0 : index
    %129 = memref.load %arg2[%c3_50, %c0_51] : memref<6x8xf32, #tpu.memory_space<smem>>
    %130 = vector.broadcast %129 : f32 to vector<1x512xf32>
    %131 = arith.mulf %1, %130 : vector<1x512xf32>
    %c3_52 = arith.constant 3 : index
    %132 = memref.load %arg3[%c3_52] : memref<6xf32, #tpu.memory_space<smem>>
    %133 = vector.broadcast %132 : f32 to vector<1x512xf32>
    %134 = arith.addf %131, %133 : vector<1x512xf32>
    %c3_53 = arith.constant 3 : index
    %c1_54 = arith.constant 1 : index
    %135 = memref.load %arg2[%c3_53, %c1_54] : memref<6x8xf32, #tpu.memory_space<smem>>
    %136 = vector.broadcast %135 : f32 to vector<1x512xf32>
    %137 = arith.mulf %2, %136 : vector<1x512xf32>
    %138 = arith.addf %134, %137 : vector<1x512xf32>
    %c3_55 = arith.constant 3 : index
    %c2_56 = arith.constant 2 : index
    %139 = memref.load %arg2[%c3_55, %c2_56] : memref<6x8xf32, #tpu.memory_space<smem>>
    %140 = vector.broadcast %139 : f32 to vector<1x512xf32>
    %141 = arith.mulf %3, %140 : vector<1x512xf32>
    %142 = arith.addf %138, %141 : vector<1x512xf32>
    %c3_57 = arith.constant 3 : index
    %c3_58 = arith.constant 3 : index
    %143 = memref.load %arg2[%c3_57, %c3_58] : memref<6x8xf32, #tpu.memory_space<smem>>
    %144 = vector.broadcast %143 : f32 to vector<1x512xf32>
    %145 = arith.mulf %4, %144 : vector<1x512xf32>
    %146 = arith.addf %142, %145 : vector<1x512xf32>
    %c3_59 = arith.constant 3 : index
    %c4_60 = arith.constant 4 : index
    %147 = memref.load %arg2[%c3_59, %c4_60] : memref<6x8xf32, #tpu.memory_space<smem>>
    %148 = vector.broadcast %147 : f32 to vector<1x512xf32>
    %149 = arith.mulf %5, %148 : vector<1x512xf32>
    %150 = arith.addf %146, %149 : vector<1x512xf32>
    %c3_61 = arith.constant 3 : index
    %c5_62 = arith.constant 5 : index
    %151 = memref.load %arg2[%c3_61, %c5_62] : memref<6x8xf32, #tpu.memory_space<smem>>
    %152 = vector.broadcast %151 : f32 to vector<1x512xf32>
    %153 = arith.mulf %6, %152 : vector<1x512xf32>
    %154 = arith.addf %150, %153 : vector<1x512xf32>
    %c3_63 = arith.constant 3 : index
    %c6_64 = arith.constant 6 : index
    %155 = memref.load %arg2[%c3_63, %c6_64] : memref<6x8xf32, #tpu.memory_space<smem>>
    %156 = vector.broadcast %155 : f32 to vector<1x512xf32>
    %157 = arith.mulf %7, %156 : vector<1x512xf32>
    %158 = arith.addf %154, %157 : vector<1x512xf32>
    %c3_65 = arith.constant 3 : index
    %c7_66 = arith.constant 7 : index
    %159 = memref.load %arg2[%c3_65, %c7_66] : memref<6x8xf32, #tpu.memory_space<smem>>
    %160 = vector.broadcast %159 : f32 to vector<1x512xf32>
    %161 = arith.mulf %8, %160 : vector<1x512xf32>
    %162 = arith.addf %158, %161 : vector<1x512xf32>
    %cst_67 = arith.constant 0.000000e+00 : f32
    %163 = vector.broadcast %cst_67 : f32 to vector<1x512xf32>
    %164 = arith.subf %163, %162 : vector<1x512xf32>
    %165 = math.exp %164 : vector<1x512xf32>
    %cst_68 = arith.constant 1.000000e+00 : f32
    %166 = vector.broadcast %cst_68 : f32 to vector<1x512xf32>
    %167 = arith.addf %166, %165 : vector<1x512xf32>
    %168 = tpu.reciprocal %167 {approx = true} : vector<1x512xf32> -> vector<1x512xf32>
    %c4_69 = arith.constant 4 : index
    %c0_70 = arith.constant 0 : index
    %169 = memref.load %arg2[%c4_69, %c0_70] : memref<6x8xf32, #tpu.memory_space<smem>>
    %170 = vector.broadcast %169 : f32 to vector<1x512xf32>
    %171 = arith.mulf %1, %170 : vector<1x512xf32>
    %c4_71 = arith.constant 4 : index
    %172 = memref.load %arg3[%c4_71] : memref<6xf32, #tpu.memory_space<smem>>
    %173 = vector.broadcast %172 : f32 to vector<1x512xf32>
    %174 = arith.addf %171, %173 : vector<1x512xf32>
    %c4_72 = arith.constant 4 : index
    %c1_73 = arith.constant 1 : index
    %175 = memref.load %arg2[%c4_72, %c1_73] : memref<6x8xf32, #tpu.memory_space<smem>>
    %176 = vector.broadcast %175 : f32 to vector<1x512xf32>
    %177 = arith.mulf %2, %176 : vector<1x512xf32>
    %178 = arith.addf %174, %177 : vector<1x512xf32>
    %c4_74 = arith.constant 4 : index
    %c2_75 = arith.constant 2 : index
    %179 = memref.load %arg2[%c4_74, %c2_75] : memref<6x8xf32, #tpu.memory_space<smem>>
    %180 = vector.broadcast %179 : f32 to vector<1x512xf32>
    %181 = arith.mulf %3, %180 : vector<1x512xf32>
    %182 = arith.addf %178, %181 : vector<1x512xf32>
    %c4_76 = arith.constant 4 : index
    %c3_77 = arith.constant 3 : index
    %183 = memref.load %arg2[%c4_76, %c3_77] : memref<6x8xf32, #tpu.memory_space<smem>>
    %184 = vector.broadcast %183 : f32 to vector<1x512xf32>
    %185 = arith.mulf %4, %184 : vector<1x512xf32>
    %186 = arith.addf %182, %185 : vector<1x512xf32>
    %c4_78 = arith.constant 4 : index
    %c4_79 = arith.constant 4 : index
    %187 = memref.load %arg2[%c4_78, %c4_79] : memref<6x8xf32, #tpu.memory_space<smem>>
    %188 = vector.broadcast %187 : f32 to vector<1x512xf32>
    %189 = arith.mulf %5, %188 : vector<1x512xf32>
    %190 = arith.addf %186, %189 : vector<1x512xf32>
    %c4_80 = arith.constant 4 : index
    %c5_81 = arith.constant 5 : index
    %191 = memref.load %arg2[%c4_80, %c5_81] : memref<6x8xf32, #tpu.memory_space<smem>>
    %192 = vector.broadcast %191 : f32 to vector<1x512xf32>
    %193 = arith.mulf %6, %192 : vector<1x512xf32>
    %194 = arith.addf %190, %193 : vector<1x512xf32>
    %c4_82 = arith.constant 4 : index
    %c6_83 = arith.constant 6 : index
    %195 = memref.load %arg2[%c4_82, %c6_83] : memref<6x8xf32, #tpu.memory_space<smem>>
    %196 = vector.broadcast %195 : f32 to vector<1x512xf32>
    %197 = arith.mulf %7, %196 : vector<1x512xf32>
    %198 = arith.addf %194, %197 : vector<1x512xf32>
    %c4_84 = arith.constant 4 : index
    %c7_85 = arith.constant 7 : index
    %199 = memref.load %arg2[%c4_84, %c7_85] : memref<6x8xf32, #tpu.memory_space<smem>>
    %200 = vector.broadcast %199 : f32 to vector<1x512xf32>
    %201 = arith.mulf %8, %200 : vector<1x512xf32>
    %202 = arith.addf %198, %201 : vector<1x512xf32>
    %cst_86 = arith.constant 0.000000e+00 : f32
    %203 = vector.broadcast %cst_86 : f32 to vector<1x512xf32>
    %204 = arith.subf %203, %202 : vector<1x512xf32>
    %205 = math.exp %204 : vector<1x512xf32>
    %cst_87 = arith.constant 1.000000e+00 : f32
    %206 = vector.broadcast %cst_87 : f32 to vector<1x512xf32>
    %207 = arith.addf %206, %205 : vector<1x512xf32>
    %208 = tpu.reciprocal %207 {approx = true} : vector<1x512xf32> -> vector<1x512xf32>
    %c5_88 = arith.constant 5 : index
    %c0_89 = arith.constant 0 : index
    %209 = memref.load %arg2[%c5_88, %c0_89] : memref<6x8xf32, #tpu.memory_space<smem>>
    %210 = vector.broadcast %209 : f32 to vector<1x512xf32>
    %211 = arith.mulf %1, %210 : vector<1x512xf32>
    %c5_90 = arith.constant 5 : index
    %212 = memref.load %arg3[%c5_90] : memref<6xf32, #tpu.memory_space<smem>>
    %213 = vector.broadcast %212 : f32 to vector<1x512xf32>
    %214 = arith.addf %211, %213 : vector<1x512xf32>
    %c5_91 = arith.constant 5 : index
    %c1_92 = arith.constant 1 : index
    %215 = memref.load %arg2[%c5_91, %c1_92] : memref<6x8xf32, #tpu.memory_space<smem>>
    %216 = vector.broadcast %215 : f32 to vector<1x512xf32>
    %217 = arith.mulf %2, %216 : vector<1x512xf32>
    %218 = arith.addf %214, %217 : vector<1x512xf32>
    %c5_93 = arith.constant 5 : index
    %c2_94 = arith.constant 2 : index
    %219 = memref.load %arg2[%c5_93, %c2_94] : memref<6x8xf32, #tpu.memory_space<smem>>
    %220 = vector.broadcast %219 : f32 to vector<1x512xf32>
    %221 = arith.mulf %3, %220 : vector<1x512xf32>
    %222 = arith.addf %218, %221 : vector<1x512xf32>
    %c5_95 = arith.constant 5 : index
    %c3_96 = arith.constant 3 : index
    %223 = memref.load %arg2[%c5_95, %c3_96] : memref<6x8xf32, #tpu.memory_space<smem>>
    %224 = vector.broadcast %223 : f32 to vector<1x512xf32>
    %225 = arith.mulf %4, %224 : vector<1x512xf32>
    %226 = arith.addf %222, %225 : vector<1x512xf32>
    %c5_97 = arith.constant 5 : index
    %c4_98 = arith.constant 4 : index
    %227 = memref.load %arg2[%c5_97, %c4_98] : memref<6x8xf32, #tpu.memory_space<smem>>
    %228 = vector.broadcast %227 : f32 to vector<1x512xf32>
    %229 = arith.mulf %5, %228 : vector<1x512xf32>
    %230 = arith.addf %226, %229 : vector<1x512xf32>
    %c5_99 = arith.constant 5 : index
    %c5_100 = arith.constant 5 : index
    %231 = memref.load %arg2[%c5_99, %c5_100] : memref<6x8xf32, #tpu.memory_space<smem>>
    %232 = vector.broadcast %231 : f32 to vector<1x512xf32>
    %233 = arith.mulf %6, %232 : vector<1x512xf32>
    %234 = arith.addf %230, %233 : vector<1x512xf32>
    %c5_101 = arith.constant 5 : index
    %c6_102 = arith.constant 6 : index
    %235 = memref.load %arg2[%c5_101, %c6_102] : memref<6x8xf32, #tpu.memory_space<smem>>
    %236 = vector.broadcast %235 : f32 to vector<1x512xf32>
    %237 = arith.mulf %7, %236 : vector<1x512xf32>
    %238 = arith.addf %234, %237 : vector<1x512xf32>
    %c5_103 = arith.constant 5 : index
    %c7_104 = arith.constant 7 : index
    %239 = memref.load %arg2[%c5_103, %c7_104] : memref<6x8xf32, #tpu.memory_space<smem>>
    %240 = vector.broadcast %239 : f32 to vector<1x512xf32>
    %241 = arith.mulf %8, %240 : vector<1x512xf32>
    %242 = arith.addf %238, %241 : vector<1x512xf32>
    %cst_105 = arith.constant 0.000000e+00 : f32
    %243 = vector.broadcast %cst_105 : f32 to vector<1x512xf32>
    %244 = arith.subf %243, %242 : vector<1x512xf32>
    %245 = math.exp %244 : vector<1x512xf32>
    %cst_106 = arith.constant 1.000000e+00 : f32
    %246 = vector.broadcast %cst_106 : f32 to vector<1x512xf32>
    %247 = arith.addf %246, %245 : vector<1x512xf32>
    %248 = tpu.reciprocal %247 {approx = true} : vector<1x512xf32> -> vector<1x512xf32>
    %c0_107 = arith.constant 0 : index
    %c0_108 = arith.constant 0 : index
    %249 = memref.load %arg4[%c0_107, %c0_108] : memref<4x6xf32, #tpu.memory_space<smem>>
    %250 = vector.broadcast %249 : f32 to vector<1x512xf32>
    %251 = arith.mulf %48, %250 : vector<1x512xf32>
    %c0_109 = arith.constant 0 : index
    %252 = memref.load %arg5[%c0_109] : memref<4xf32, #tpu.memory_space<smem>>
    %253 = vector.broadcast %252 : f32 to vector<1x512xf32>
    %254 = arith.addf %251, %253 : vector<1x512xf32>
    %c0_110 = arith.constant 0 : index
    %c1_111 = arith.constant 1 : index
    %255 = memref.load %arg4[%c0_110, %c1_111] : memref<4x6xf32, #tpu.memory_space<smem>>
    %256 = vector.broadcast %255 : f32 to vector<1x512xf32>
    %257 = arith.mulf %88, %256 : vector<1x512xf32>
    %258 = arith.addf %254, %257 : vector<1x512xf32>
    %c0_112 = arith.constant 0 : index
    %c2_113 = arith.constant 2 : index
    %259 = memref.load %arg4[%c0_112, %c2_113] : memref<4x6xf32, #tpu.memory_space<smem>>
    %260 = vector.broadcast %259 : f32 to vector<1x512xf32>
    %261 = arith.mulf %128, %260 : vector<1x512xf32>
    %262 = arith.addf %258, %261 : vector<1x512xf32>
    %c0_114 = arith.constant 0 : index
    %c3_115 = arith.constant 3 : index
    %263 = memref.load %arg4[%c0_114, %c3_115] : memref<4x6xf32, #tpu.memory_space<smem>>
    %264 = vector.broadcast %263 : f32 to vector<1x512xf32>
    %265 = arith.mulf %168, %264 : vector<1x512xf32>
    %266 = arith.addf %262, %265 : vector<1x512xf32>
    %c0_116 = arith.constant 0 : index
    %c4_117 = arith.constant 4 : index
    %267 = memref.load %arg4[%c0_116, %c4_117] : memref<4x6xf32, #tpu.memory_space<smem>>
    %268 = vector.broadcast %267 : f32 to vector<1x512xf32>
    %269 = arith.mulf %208, %268 : vector<1x512xf32>
    %270 = arith.addf %266, %269 : vector<1x512xf32>
    %c0_118 = arith.constant 0 : index
    %c5_119 = arith.constant 5 : index
    %271 = memref.load %arg4[%c0_118, %c5_119] : memref<4x6xf32, #tpu.memory_space<smem>>
    %272 = vector.broadcast %271 : f32 to vector<1x512xf32>
    %273 = arith.mulf %248, %272 : vector<1x512xf32>
    %274 = arith.addf %270, %273 : vector<1x512xf32>
    %cst_120 = arith.constant 0.000000e+00 : f32
    %275 = vector.broadcast %cst_120 : f32 to vector<1x512xf32>
    %276 = arith.subf %275, %274 : vector<1x512xf32>
    %277 = math.exp %276 : vector<1x512xf32>
    %cst_121 = arith.constant 1.000000e+00 : f32
    %278 = vector.broadcast %cst_121 : f32 to vector<1x512xf32>
    %279 = arith.addf %278, %277 : vector<1x512xf32>
    %280 = tpu.reciprocal %279 {approx = true} : vector<1x512xf32> -> vector<1x512xf32>
    %c1_122 = arith.constant 1 : index
    %c0_123 = arith.constant 0 : index
    %281 = memref.load %arg4[%c1_122, %c0_123] : memref<4x6xf32, #tpu.memory_space<smem>>
    %282 = vector.broadcast %281 : f32 to vector<1x512xf32>
    %283 = arith.mulf %48, %282 : vector<1x512xf32>
    %c1_124 = arith.constant 1 : index
    %284 = memref.load %arg5[%c1_124] : memref<4xf32, #tpu.memory_space<smem>>
    %285 = vector.broadcast %284 : f32 to vector<1x512xf32>
    %286 = arith.addf %283, %285 : vector<1x512xf32>
    %c1_125 = arith.constant 1 : index
    %c1_126 = arith.constant 1 : index
    %287 = memref.load %arg4[%c1_125, %c1_126] : memref<4x6xf32, #tpu.memory_space<smem>>
    %288 = vector.broadcast %287 : f32 to vector<1x512xf32>
    %289 = arith.mulf %88, %288 : vector<1x512xf32>
    %290 = arith.addf %286, %289 : vector<1x512xf32>
    %c1_127 = arith.constant 1 : index
    %c2_128 = arith.constant 2 : index
    %291 = memref.load %arg4[%c1_127, %c2_128] : memref<4x6xf32, #tpu.memory_space<smem>>
    %292 = vector.broadcast %291 : f32 to vector<1x512xf32>
    %293 = arith.mulf %128, %292 : vector<1x512xf32>
    %294 = arith.addf %290, %293 : vector<1x512xf32>
    %c1_129 = arith.constant 1 : index
    %c3_130 = arith.constant 3 : index
    %295 = memref.load %arg4[%c1_129, %c3_130] : memref<4x6xf32, #tpu.memory_space<smem>>
    %296 = vector.broadcast %295 : f32 to vector<1x512xf32>
    %297 = arith.mulf %168, %296 : vector<1x512xf32>
    %298 = arith.addf %294, %297 : vector<1x512xf32>
    %c1_131 = arith.constant 1 : index
    %c4_132 = arith.constant 4 : index
    %299 = memref.load %arg4[%c1_131, %c4_132] : memref<4x6xf32, #tpu.memory_space<smem>>
    %300 = vector.broadcast %299 : f32 to vector<1x512xf32>
    %301 = arith.mulf %208, %300 : vector<1x512xf32>
    %302 = arith.addf %298, %301 : vector<1x512xf32>
    %c1_133 = arith.constant 1 : index
    %c5_134 = arith.constant 5 : index
    %303 = memref.load %arg4[%c1_133, %c5_134] : memref<4x6xf32, #tpu.memory_space<smem>>
    %304 = vector.broadcast %303 : f32 to vector<1x512xf32>
    %305 = arith.mulf %248, %304 : vector<1x512xf32>
    %306 = arith.addf %302, %305 : vector<1x512xf32>
    %cst_135 = arith.constant 0.000000e+00 : f32
    %307 = vector.broadcast %cst_135 : f32 to vector<1x512xf32>
    %308 = arith.subf %307, %306 : vector<1x512xf32>
    %309 = math.exp %308 : vector<1x512xf32>
    %cst_136 = arith.constant 1.000000e+00 : f32
    %310 = vector.broadcast %cst_136 : f32 to vector<1x512xf32>
    %311 = arith.addf %310, %309 : vector<1x512xf32>
    %312 = tpu.reciprocal %311 {approx = true} : vector<1x512xf32> -> vector<1x512xf32>
    %c2_137 = arith.constant 2 : index
    %c0_138 = arith.constant 0 : index
    %313 = memref.load %arg4[%c2_137, %c0_138] : memref<4x6xf32, #tpu.memory_space<smem>>
    %314 = vector.broadcast %313 : f32 to vector<1x512xf32>
    %315 = arith.mulf %48, %314 : vector<1x512xf32>
    %c2_139 = arith.constant 2 : index
    %316 = memref.load %arg5[%c2_139] : memref<4xf32, #tpu.memory_space<smem>>
    %317 = vector.broadcast %316 : f32 to vector<1x512xf32>
    %318 = arith.addf %315, %317 : vector<1x512xf32>
    %c2_140 = arith.constant 2 : index
    %c1_141 = arith.constant 1 : index
    %319 = memref.load %arg4[%c2_140, %c1_141] : memref<4x6xf32, #tpu.memory_space<smem>>
    %320 = vector.broadcast %319 : f32 to vector<1x512xf32>
    %321 = arith.mulf %88, %320 : vector<1x512xf32>
    %322 = arith.addf %318, %321 : vector<1x512xf32>
    %c2_142 = arith.constant 2 : index
    %c2_143 = arith.constant 2 : index
    %323 = memref.load %arg4[%c2_142, %c2_143] : memref<4x6xf32, #tpu.memory_space<smem>>
    %324 = vector.broadcast %323 : f32 to vector<1x512xf32>
    %325 = arith.mulf %128, %324 : vector<1x512xf32>
    %326 = arith.addf %322, %325 : vector<1x512xf32>
    %c2_144 = arith.constant 2 : index
    %c3_145 = arith.constant 3 : index
    %327 = memref.load %arg4[%c2_144, %c3_145] : memref<4x6xf32, #tpu.memory_space<smem>>
    %328 = vector.broadcast %327 : f32 to vector<1x512xf32>
    %329 = arith.mulf %168, %328 : vector<1x512xf32>
    %330 = arith.addf %326, %329 : vector<1x512xf32>
    %c2_146 = arith.constant 2 : index
    %c4_147 = arith.constant 4 : index
    %331 = memref.load %arg4[%c2_146, %c4_147] : memref<4x6xf32, #tpu.memory_space<smem>>
    %332 = vector.broadcast %331 : f32 to vector<1x512xf32>
    %333 = arith.mulf %208, %332 : vector<1x512xf32>
    %334 = arith.addf %330, %333 : vector<1x512xf32>
    %c2_148 = arith.constant 2 : index
    %c5_149 = arith.constant 5 : index
    %335 = memref.load %arg4[%c2_148, %c5_149] : memref<4x6xf32, #tpu.memory_space<smem>>
    %336 = vector.broadcast %335 : f32 to vector<1x512xf32>
    %337 = arith.mulf %248, %336 : vector<1x512xf32>
    %338 = arith.addf %334, %337 : vector<1x512xf32>
    %cst_150 = arith.constant 0.000000e+00 : f32
    %339 = vector.broadcast %cst_150 : f32 to vector<1x512xf32>
    %340 = arith.subf %339, %338 : vector<1x512xf32>
    %341 = math.exp %340 : vector<1x512xf32>
    %cst_151 = arith.constant 1.000000e+00 : f32
    %342 = vector.broadcast %cst_151 : f32 to vector<1x512xf32>
    %343 = arith.addf %342, %341 : vector<1x512xf32>
    %344 = tpu.reciprocal %343 {approx = true} : vector<1x512xf32> -> vector<1x512xf32>
    %c3_152 = arith.constant 3 : index
    %c0_153 = arith.constant 0 : index
    %345 = memref.load %arg4[%c3_152, %c0_153] : memref<4x6xf32, #tpu.memory_space<smem>>
    %346 = vector.broadcast %345 : f32 to vector<1x512xf32>
    %347 = arith.mulf %48, %346 : vector<1x512xf32>
    %c3_154 = arith.constant 3 : index
    %348 = memref.load %arg5[%c3_154] : memref<4xf32, #tpu.memory_space<smem>>
    %349 = vector.broadcast %348 : f32 to vector<1x512xf32>
    %350 = arith.addf %347, %349 : vector<1x512xf32>
    %c3_155 = arith.constant 3 : index
    %c1_156 = arith.constant 1 : index
    %351 = memref.load %arg4[%c3_155, %c1_156] : memref<4x6xf32, #tpu.memory_space<smem>>
    %352 = vector.broadcast %351 : f32 to vector<1x512xf32>
    %353 = arith.mulf %88, %352 : vector<1x512xf32>
    %354 = arith.addf %350, %353 : vector<1x512xf32>
    %c3_157 = arith.constant 3 : index
    %c2_158 = arith.constant 2 : index
    %355 = memref.load %arg4[%c3_157, %c2_158] : memref<4x6xf32, #tpu.memory_space<smem>>
    %356 = vector.broadcast %355 : f32 to vector<1x512xf32>
    %357 = arith.mulf %128, %356 : vector<1x512xf32>
    %358 = arith.addf %354, %357 : vector<1x512xf32>
    %c3_159 = arith.constant 3 : index
    %c3_160 = arith.constant 3 : index
    %359 = memref.load %arg4[%c3_159, %c3_160] : memref<4x6xf32, #tpu.memory_space<smem>>
    %360 = vector.broadcast %359 : f32 to vector<1x512xf32>
    %361 = arith.mulf %168, %360 : vector<1x512xf32>
    %362 = arith.addf %358, %361 : vector<1x512xf32>
    %c3_161 = arith.constant 3 : index
    %c4_162 = arith.constant 4 : index
    %363 = memref.load %arg4[%c3_161, %c4_162] : memref<4x6xf32, #tpu.memory_space<smem>>
    %364 = vector.broadcast %363 : f32 to vector<1x512xf32>
    %365 = arith.mulf %208, %364 : vector<1x512xf32>
    %366 = arith.addf %362, %365 : vector<1x512xf32>
    %c3_163 = arith.constant 3 : index
    %c5_164 = arith.constant 5 : index
    %367 = memref.load %arg4[%c3_163, %c5_164] : memref<4x6xf32, #tpu.memory_space<smem>>
    %368 = vector.broadcast %367 : f32 to vector<1x512xf32>
    %369 = arith.mulf %248, %368 : vector<1x512xf32>
    %370 = arith.addf %366, %369 : vector<1x512xf32>
    %cst_165 = arith.constant 0.000000e+00 : f32
    %371 = vector.broadcast %cst_165 : f32 to vector<1x512xf32>
    %372 = arith.subf %371, %370 : vector<1x512xf32>
    %373 = math.exp %372 : vector<1x512xf32>
    %cst_166 = arith.constant 1.000000e+00 : f32
    %374 = vector.broadcast %cst_166 : f32 to vector<1x512xf32>
    %375 = arith.addf %374, %373 : vector<1x512xf32>
    %376 = tpu.reciprocal %375 {approx = true} : vector<1x512xf32> -> vector<1x512xf32>
    %c0_167 = arith.constant 0 : index
    %c0_168 = arith.constant 0 : index
    %377 = memref.load %arg6[%c0_167, %c0_168] : memref<1x4xf32, #tpu.memory_space<smem>>
    %378 = vector.broadcast %377 : f32 to vector<1x512xf32>
    %379 = arith.mulf %280, %378 : vector<1x512xf32>
    %c0_169 = arith.constant 0 : index
    %380 = memref.load %arg7[%c0_169] : memref<1xf32, #tpu.memory_space<smem>>
    %381 = vector.broadcast %380 : f32 to vector<1x512xf32>
    %382 = arith.addf %379, %381 : vector<1x512xf32>
    %c0_170 = arith.constant 0 : index
    %c1_171 = arith.constant 1 : index
    %383 = memref.load %arg6[%c0_170, %c1_171] : memref<1x4xf32, #tpu.memory_space<smem>>
    %384 = vector.broadcast %383 : f32 to vector<1x512xf32>
    %385 = arith.mulf %312, %384 : vector<1x512xf32>
    %386 = arith.addf %382, %385 : vector<1x512xf32>
    %c0_172 = arith.constant 0 : index
    %c2_173 = arith.constant 2 : index
    %387 = memref.load %arg6[%c0_172, %c2_173] : memref<1x4xf32, #tpu.memory_space<smem>>
    %388 = vector.broadcast %387 : f32 to vector<1x512xf32>
    %389 = arith.mulf %344, %388 : vector<1x512xf32>
    %390 = arith.addf %386, %389 : vector<1x512xf32>
    %c0_174 = arith.constant 0 : index
    %c3_175 = arith.constant 3 : index
    %391 = memref.load %arg6[%c0_174, %c3_175] : memref<1x4xf32, #tpu.memory_space<smem>>
    %392 = vector.broadcast %391 : f32 to vector<1x512xf32>
    %393 = arith.mulf %376, %392 : vector<1x512xf32>
    %394 = arith.addf %390, %393 : vector<1x512xf32>
    %cst_176 = arith.constant 0.000000e+00 : f32
    %395 = vector.broadcast %cst_176 : f32 to vector<1x512xf32>
    %396 = arith.subf %395, %394 : vector<1x512xf32>
    %397 = math.exp %396 : vector<1x512xf32>
    %cst_177 = arith.constant 1.000000e+00 : f32
    %398 = vector.broadcast %cst_177 : f32 to vector<1x512xf32>
    %399 = arith.addf %398, %397 : vector<1x512xf32>
    %400 = tpu.reciprocal %399 {approx = true} : vector<1x512xf32> -> vector<1x512xf32>
    %c0_178 = arith.constant 0 : index
    %c0_179 = arith.constant 0 : index
    %401 = vector.load %arg8[%c0_178, %c0_179] : memref<1x512xf32, #tpu.memory_space<vmem>>, vector<1x512xf32>
    tpu.vector_store %arg8[%c0_178, %c0_179], %400 {strides = array<i32>} : memref<1x512xf32, #tpu.memory_space<vmem>>, vector<1x512xf32>,
    return
  }
  func.func @transform_0(%arg0: i32) -> (i32, i32) {
    %c0_i32 = arith.constant 0 : i32
    %c0_i32_0 = arith.constant 0 : i32
    return %c0_i32, %arg0 : i32, i32
  }
  func.func @transform_1(%arg0: i32) -> (i32, i32) {
    %c0_i32 = arith.constant 0 : i32
    %c0_i32_0 = arith.constant 0 : i32
    %c0_i32_1 = arith.constant 0 : i32
    return %c0_i32, %c0_i32_0 : i32, i32
  }
  func.func @transform_2(%arg0: i32) -> i32 {
    %c0_i32 = arith.constant 0 : i32
    %c0_i32_0 = arith.constant 0 : i32
    return %c0_i32 : i32
  }
  func.func @transform_3(%arg0: i32) -> (i32, i32) {
    %c0_i32 = arith.constant 0 : i32
    %c0_i32_0 = arith.constant 0 : i32
    %c0_i32_1 = arith.constant 0 : i32
    return %c0_i32, %c0_i32_0 : i32, i32
  }
  func.func @transform_4(%arg0: i32) -> i32 {
    %c0_i32 = arith.constant 0 : i32
    %c0_i32_0 = arith.constant 0 : i32
    return %c0_i32 : i32
  }
  func.func @transform_5(%arg0: i32) -> (i32, i32) {
    %c0_i32 = arith.constant 0 : i32
    %c0_i32_0 = arith.constant 0 : i32
    %c0_i32_1 = arith.constant 0 : i32
    return %c0_i32, %c0_i32_0 : i32, i32
  }
  func.func @transform_6(%arg0: i32) -> i32 {
    %c0_i32 = arith.constant 0 : i32
    %c0_i32_0 = arith.constant 0 : i32
    return %c0_i32 : i32
  }
  func.func @transform_7(%arg0: i32) -> (i32, i32) {
    %c0_i32 = arith.constant 0 : i32
    %c0_i32_0 = arith.constant 0 : i32
    return %c0_i32, %arg0 : i32, i32
  }
}

</mosaic_0001>

<bundles_post_ra>
// kernel: tpu_custom_call.1
= control target key start
LH: loop header
LB: loop body
LE: loop exit
PB: predicated region body
PF: predicated region fallthrough
CT: control target
= control target key end

     0   :  { %s3547_s0 = inlined_call_operand.hbm [shape: f32[8,1024], index: 0, kind: input, shape index: {}]   ;;  %s3548_s1 = inlined_call_operand.hbm [shape: f32[6,8], index: 1, kind: input, shape index: {}]   ;;  %s3549_s2 = inlined_call_operand.vmem [shape: f32[6], index: 2, kind: input, shape index: {}]   ;;  %s3550_s3 = inlined_call_operand.vmem [shape: f32[4,6], index: 3, kind: input, shape index: {}]   ;;  %s3551_s4 = inlined_call_operand.vmem [shape: f32[4], index: 4, kind: input, shape index: {}]   ;;  %s3552_s5 = inlined_call_operand.vmem [shape: f32[1,4], index: 5, kind: input, shape index: {}]   ;;  %s3553_s6 = inlined_call_operand.<no memory space> [shape: f32[1], index: 6, kind: input, shape index: {}]   ;;  %s3554_s7 = inlined_call_operand.hbm [shape: f32[1,1024], index: 7, kind: output, shape index: {}]  }
   0x1   :  { %12 = sst [smem:[#allocation2]] %s3553_s6 }
   0x2   :  { %13 = vsyncpa [#allocation4], 0 }
   0x3   :  { %15 = vsyncpa [#allocation4 + $0x1], 0 }
   0x4   :  { %16 = vsyncpa [#allocation6], 0 }
   0x5   :  { %17 = vsyncpa [#allocation7], 0 }
   0x6   :  { %18 = vsyncpa [#allocation11], 0 }
   0x7   :  { %19 = vsyncpa [#allocation14], 0 }
   0x8   :  { %20 = vsyncpa [#allocation5], 0 }
   0x9   :  { %22 = vsyncpa [#allocation5 + $0x1], 0  ;;  %s2666_s26 = smov 0   ;;  %s2668_s27 = smov 0  }
   0xa   :  { %s2670_s28 = smov 0   ;;  %s2672_s29 = smov 0  }
   0xb LB: > { %s244_s8 = sshll.u32 %s3550_s3, 4  ;;  %s2690_s9 = sadd.s32 4294967295, %s2613_s29   ;;  %s2613_s29 = sphi %s2672_s29, %s3580_s29   ;;  %s2609_s28 = sphi %s2670_s28, %s3579_s28   ;;  %s2605_s27 = sphi %s2668_s27, %s3578_s27   ;;  %s2601_s26 = sphi %s2666_s26, %s3577_s26   ;;  %s245_s8 = int_to_ptr.vmem [resolvable:$true] %s244_s8 }
   0xc   : > { %p2044_p0 = scmp.ge.s32.totalorder %s2613_s29, 1  ;;  %p3555_p1 = scmp.eq.s32.totalorder %s2690_s9, 0 }
   0xd   : > { %p211_p2 = scmp.lt.s32.totalorder %s2613_s29, 3  ;;  %s233_s13 = sshll.u32 %s3549_s2, 4  ;;  %s2705_s13 = int_to_ptr.vmem [resolvable:$true] %s233_s13 }
   0xe   : > { %s255_s16 = sshll.u32 %s3551_s4, 4  ;;  %s266_s20 = sshll.u32 %s3552_s5, 4  ;;  %s2716_s16 = int_to_ptr.vmem [resolvable:$true] %s255_s16  ;;  %s2721_s20 = int_to_ptr.vmem [resolvable:$true] %s266_s20 }
   0xf   : > { %p2695_p3 = pnand %p2044_p0, %p211_p2  ;;  %s2428_s21 = scalar_lea.vmem %s245_s8, 64 }
  0x10   : > { %p2429_p7 = scmp.ne.s32.totalorder %s245_s8, %s2428_s21  ;;  %p2436_p11 = scmp.lt.s32.totalorder %s245_s8, %s245_s8 }
  0x11   : > { %p2174_p5 = pneg %p2695_p3  ;;  %p2437_p12 = scmp.lt.s32.totalorder %s2428_s21, %s2428_s21 }
  0x13   : > { %p2712_p6 = pnand %p2174_p5, %p3555_p1  ;;  %p2438_p13 = por %p2437_p12, %p2436_p11 }
  0x15   : > { %p2725_p8 = pneg %p2712_p6 }
  0x17   : > { %p2431_p9 = pnand %p2725_p8, %p2429_p7 }
  0x19   : > { %p2432_p10 = pneg %p2431_p9 }
  0x1b   : > { %p2439_p0 = pnand %p2438_p13, %p2432_p10 }
  0x1d   : > { %2442 = shalt.err (!%p2439_p0)
}
  0x1e   : > { %s2615_s23 = smov [#allocation10]   ;;  %s2443_s6 = scalar_lea.hbm %s3548_s1, 128 }
  0x1f   : > { %2183 = dma.vmem_to_smem (!%p2712_p6), %s245_s8, 64, %s2615_s23, [#allocation11]  }
  0x20   : > { %p2444_p2 = scmp.ne.s32.totalorder %s3548_s1, %s2443_s6  ;;  %p2450_p9 = scmp.lt.u32.totalorder %s2443_s6, %s3548_s1 }
  0x22   : > { %p2446_p5 = pnand %p2444_p2, %p2725_p8 }
  0x24   : > { %p2447_p7 = pneg %p2446_p5 }
  0x26   : > { %p2452_p10 = pnand %p2450_p9, %p2447_p7 }
  0x28   : > { %2455 = shalt.err (!%p2452_p10)
}
  0x29   : > { %s2616_s15 = smov [#allocation8]   ;;  %s2456_s19 = scalar_lea.vmem %s2705_s13, 16 }
  0x2a   : > { %2177 = dma.hbm_to_smem (!%p2712_p6), %s3548_s1, 128, %s2616_s15, [#allocation6]  }
  0x2b   : > { %p2457_p11 = scmp.ne.s32.totalorder %s2705_s13, %s2456_s19  ;;  %p2464_p0 = scmp.lt.s32.totalorder %s2705_s13, %s2705_s13 }
  0x2c   : > { %p2465_p2 = scmp.lt.s32.totalorder %s2456_s19, %s2456_s19 }
  0x2d   : > { %p2459_p12 = pnand %p2457_p11, %p2725_p8 }
  0x2e   : > { %p2466_p5 = por %p2465_p2, %p2464_p0 }
  0x2f   : > { %p2460_p13 = pneg %p2459_p12 }
  0x31   : > { %p2467_p7 = pnand %p2466_p5, %p2460_p13 }
  0x33   : > { %2470 = shalt.err (!%p2467_p7)
}
  0x34   : > { %s2617_s21 = smov [#allocation9]   ;;  %s2471_s23 = scalar_lea.vmem %s2716_s16, 16 }
  0x35   : > { %2180 = dma.vmem_to_smem (!%p2712_p6), %s2705_s13, 16, %s2617_s21, [#allocation7]  }
  0x36   : > { %p2472_p9 = scmp.ne.s32.totalorder %s2716_s16, %s2471_s23  ;;  %p2479_p12 = scmp.lt.s32.totalorder %s2716_s16, %s2716_s16 }
  0x37   : > { %p2480_p4 = scmp.lt.s32.totalorder %s2471_s23, %s2471_s23 }
  0x38   : > { %p2474_p10 = pnand %p2472_p9, %p2725_p8 }
  0x39   : > { %p2481_p0 = por %p2480_p4, %p2479_p12 }
  0x3a   : > { %p2475_p11 = pneg %p2474_p10 }
  0x3c   : > { %p2482_p13 = pnand %p2481_p0, %p2475_p11 }
  0x3e   : > { %2485 = shalt.err (!%p2482_p13)
}
  0x3f   : > { %s2618_s24 = smov [#allocation12]   ;;  %s2486_s13 = scalar_lea.vmem %s2721_s20, 16 }
  0x40   : > { %2186 = dma.vmem_to_smem (!%p2712_p6), %s2716_s16, 16, %s2618_s24, [#allocation11]  }
  0x41   : > { %p2487_p2 = scmp.ne.s32.totalorder %s2721_s20, %s2486_s13  ;;  %p2494_p9 = scmp.lt.s32.totalorder %s2721_s20, %s2721_s20 }
  0x42   : > { %p2495_p10 = scmp.lt.s32.totalorder %s2486_s13, %s2486_s13 }
  0x43   : > { %p2489_p5 = pnand %p2487_p2, %p2725_p8 }
  0x44   : > { %p2496_p4 = por %p2495_p10, %p2494_p9 }
  0x45   : > { %p2490_p7 = pneg %p2489_p5 }
  0x47   : > { %p2497_p11 = pnand %p2496_p4, %p2490_p7 }
  0x49   : > { %2500 = shalt.err (!%p2497_p11)
}
  0x4a   : > { %s2619_s25 = smov [#allocation13]   ;;  %s2043_s16 = sadd.s32 4294967294, %s2613_s29  }
  0x4b   : > { %2189 = dma.vmem_to_smem (!%p2712_p6), %s2721_s20, 16, %s2619_s25, [#allocation14]  }
  0x4c   : > { %s2778_s22 = sadd.s32 1, %s2613_s29   ;;  %s35_s17 = sadd.s32 1, %s2609_s28 }
  0x4d   : > { %s32_s6 = ssub.s32 %s2613_s29, %s2778_s22  ;;  %p42_p8 = scmp.ne.s32.totalorder %s2609_s28, %s2605_s27 }
  0x4e   : > { %p33_p12 = scmp.eq.s32.totalorder %s32_s6, 0  ;;  %p43_p0 = scmp.eq.s32.totalorder %s2613_s29, 0 }
  0x4f   : > { %p48_p13 = scmp.ne.s32.totalorder %s2605_s27, %s2601_s26  ;;  %p198_p2 = scmp.eq.s32.totalorder %s2690_s9, 1 }
  0x50   : > { %s2790_s30 = scalar_select %p33_p12, %s2609_s28, %s35_s17  }
  0x51   : > { %p44_p5 = por %p43_p0, %p42_p8  ;;  %p2794_p7 = por %p3555_p1, %p48_p13 }
  0x52   : > { %p2798_p6 = por %p198_p2, %p42_p8  ;;  %p204_p9 = scmp.eq.s32.totalorder %s2043_s16, 1 }
  0x53   : > { %s3561_s11 = scalar_select %p2794_p7, 1, 0 }
  0x54   : > { %s3562_s20 = scalar_select %p2798_p6, 1, 0 }
  0x55   : > { %p2203_p10 = scmp.lt.s32.totalorder %s2613_s29, 2  ;;  %s280_s12 = sand.u32 1, %s2609_s28  }
  0x56   : > { %p2804_p4 = por %p204_p9, %p48_p13  ;;  %s2051_s15 = sshll.u32 %s280_s12, 5 }
  0x57   : > { %s2148_s8 = sshll.u32 %s2613_s29, 9  ;;  %s284_s23 = scalar_lea.vmem [#allocation3], %s2051_s15 }
  0x58   : > { %s3563_s14 = scalar_select %p2804_p4, 1, 0 }
  0x59   : > { %s2812_s21 = scalar_lea.hbm %s3547_s0, %s2148_s8  ;;  %s292_s24 = sshll.u32 %s284_s23, 4  ;;  %s2818_s24 = int_to_ptr.vmem [resolvable:$true] %s292_s24 }
  0x5a   : > { %p2814_p11 = pnand %p2203_p10, %p44_p5  ;;  %s281_s25 = scalar_lea.sflag [#allocation4], %s280_s12 }
  0x5b   : > { %s2501_s16 = scalar_lea.hbm %s2812_s21, 512  ;;  %s2506_s15 = scalar_lea.hbm %s3547_s0, 1024 }
  0x5c   : > { %p2502_p8 = scmp.ne.s32.totalorder %s2812_s21, %s2501_s16  ;;  %p2503_p12 = pneg %p2814_p11 }
  0x5d   : > { %p2507_p2 = scmp.lt.u32.totalorder %s2812_s21, %s3547_s0  ;;  %p2508_p5 = scmp.lt.u32.totalorder %s2506_s15, %s2501_s16 }
  0x5e   : > { %p2504_p0 = pnand %p2503_p12, %p2502_p8  ;;  %p2510_p10 = scmp.lt.u32.totalorder %s2501_s16, %s2812_s21 }
  0x5f   : > { %p2509_p9 = por %p2508_p5, %p2507_p2 }
  0x60   : > { %p2505_p13 = pneg %p2504_p0 }
  0x61   : > { %p2511_p1 = por %p2510_p10, %p2509_p9 }
  0x63   : > { %p2512_p4 = pnand %p2511_p1, %p2505_p13 }
  0x65   : > { %2515 = shalt.err (!%p2512_p4)
}
  0x66   : > { %s2516_s12 = scalar_lea.vmem %s2818_s24, 512  ;;  %s2620_s19 = smov [#allocation3]  }
  0x67   : > { %p2517_p8 = scmp.ne.s32.totalorder %s2818_s24, %s2516_s12  ;;  %s2521_s23 = sshll.u32 %s2620_s19, 4  ;;  %s2522_s23 = int_to_ptr.vmem [resolvable:$false] %s2521_s23 }
  0x68   : > { %s2523_s17 = scalar_lea.vmem %s2522_s23, 1024  ;;  %p2524_p7 = scmp.lt.s32.totalorder %s2818_s24, %s2522_s23 }
  0x69   : > { %p2519_p0 = pnand %p2517_p8, %p2503_p12  ;;  %p2525_p2 = scmp.lt.s32.totalorder %s2523_s17, %s2516_s12 }
  0x6b   : > { %p2520_p6 = pneg %p2519_p0  ;;  %p2526_p5 = por %p2525_p2, %p2524_p7 }
  0x6d   : > { %p2527_p9 = pnand %p2526_p5, %p2520_p6 }
  0x6f   : > { %2530 = shalt.err (!%p2527_p9)
}
  0x70   : > { %2193 = dma.hbm_to_vmem [thread:$0]  (!%p2814_p11), %s2812_s21, 512, %s2818_s24, %s281_s25  }
  0x71   : > { %301 = sbr.rel (%p2695_p3) target bundleno = 476 (0x1dc), region = 48  ;;  %s2848_s16 = sand.u32 (!%p2695_p3), 1, %s2605_s27  }
  0x72   : > { %s2055_s6 = sshll.u32 (!%p2695_p3), %s2848_s16, 5  ;;  %s304_s15 = scalar_lea.sflag (!%p2695_p3), [#allocation4], %s2848_s16 }
  0x73   : > { %s2852_s8 = scalar_lea.vmem (!%p2695_p3), [#allocation3], %s2055_s6  ;;  %p3565_p1 = scmp.ne.s32.totalorder (!%p2695_p3), %s3561_s11, 0 }
  0x78   : > { %2576 = dma.done.wait (%p3565_p1), %s304_s15, 512  }
  0x79   : > { %2578 = vsyncadd (%p3565_p1), %s304_s15, 4294966784  ;;  %p3566_p7 = scmp.eq.s32.totalorder %s2690_s9, 0 }
  0x7b   : > { %2580 = dma.done.wait (%p3566_p7), [#allocation6], 128   ;;  %p3567_p3 = pmov %p3566_p7 }
  0x7d   : > { %2582 = vsyncadd (%p3567_p3), [#allocation6], 4294967168  ;;  %p3568_p6 = pmov %p3567_p3 }
  0x7e   : > { %p3569_p4 = pmov %p3567_p3 }
  0x7f   : > { %2584 = dma.done.wait (%p3568_p6), [#allocation7], 16  }
  0x80   : > { %2586 = vsyncadd (%p3569_p4), [#allocation7], 4294967280  ;;  %p3570_p11 = pmov %p3567_p3 }
  0x81   : > { %p3571_p12 = pmov %p3567_p3 }
  0x82   : > { %2588 = dma.done.wait (%p3570_p11), [#allocation11], 80  }
  0x83   : > { %2590 = vsyncadd (%p3571_p12), [#allocation11], 4294967216  ;;  %p3572_p13 = pmov %p3567_p3 }
  0x84   : > { %p3573_p10 = pmov %p3567_p3 }
  0x85   : > { %2592 = dma.done.wait (%p3572_p13), [#allocation14], 16  }
  0x86   : > { %2594 = vsyncadd (%p3573_p10), [#allocation14], 4294967280 }
  0x87   : > { %332 = sfence }
  0x88   : > { %s365_s10 = sld [smem:[#allocation8]]  ;;  %s2062_s21 = sld [smem:[#allocation8 + $0x1]]  ;;  %v2875_v0 = vld [vmem:[%s2852_s8] sm:$0xff]  ;;  %v2878_v1 = vld [vmem:[%s2852_s8 + $0x8] sm:$0xff]  ;;  %v2881_v2 = vld [vmem:[%s2852_s8 + $0x10] sm:$0xff] }
  0x89   : > { %s371_s11 = sld [smem:[#allocation9]]  ;;  %s2063_s24 = sld [smem:[#allocation8 + $0x2]]  ;;  %v2884_v3 = vld [vmem:[%s2852_s8 + $0x18] sm:$0xff] }
  0x8a   : > { %s2886_s13 = sld [smem:[#allocation8 + $0x3]]  ;;  %s2888_s25 = sld [smem:[#allocation8 + $0x4]] }
  0x8b   : > { %s2894_s18 = sld [smem:[#allocation8 + $0x5]]  ;;  %s2896_s12 = sld [smem:[#allocation8 + $0x6]] }
  0x8c   : > { %s2918_s19 = sld [smem:[#allocation8 + $0x7]]  ;;  %s2920_s23 = sld [smem:[#allocation8 + $0x80]] }
  0x8d   : > { %s2922_s17 = sld [smem:[#allocation9 + $0x1]]  ;;  %s2942_s15 = sld [smem:[#allocation8 + $0x82]] }
  0x8e   : > { %v366_v4 = vstv %s365_s10  ;;  %v378_v10 = vstv %s2062_s21  ;;  %s2924_s6 = sld [smem:[#allocation8 + $0x81]]  ;;  %s2948_s10 = sld [smem:[#allocation8 + $0x83]] }
  0x8f   : > { %v367_v5 = vmul.f32 %v366_v4, %v2875_v0  ;;  %v368_v6 = vmul.f32 %v366_v4, %v2878_v1  ;;  %v369_v7 = vmul.f32 %v366_v4, %v2881_v2  ;;  %v370_v8 = vmul.f32 %v366_v4, %v2884_v3  ;;  %s2956_s21 = sld [smem:[#allocation8 + $0x85]]  ;;  %p3574_p0 = scmp.ne.s32.totalorder %s3562_s20, 0 }
  0x90   : > { %v372_v9 = vstv %s371_s11  ;;  %v400_v11 = vstv %s2063_s24  ;;  %v379_v16 = vmul.f32 %v378_v10, %v2875_v0  ;;  %v380_v17 = vmul.f32 %v378_v10, %v2878_v1  ;;  %s2954_s11 = sld [smem:[#allocation8 + $0x84]]  ;;  %s2972_s24 = sld [smem:[#allocation8 + $0x86]] }
  0x91   : > { %v373_v12 = vadd.f32 %v372_v9, %v367_v5  ;;  %v374_v13 = vadd.f32 %v372_v9, %v368_v6  ;;  %v375_v14 = vadd.f32 %v372_v9, %v369_v7  ;;  %v376_v15 = vadd.f32 %v372_v9, %v370_v8 }
  0x92   : > { %v381_v18 = vmul.f32 %v378_v10, %v2881_v2  ;;  %v382_v19 = vmul.f32 %v378_v10, %v2884_v3  ;;  %v401_v20 = vmul.f32 %v400_v11, %v2875_v0  ;;  %v402_v21 = vmul.f32 %v400_v11, %v2878_v1 }
  0x93   : > { %v403_v22 = vmul.f32 %v400_v11, %v2881_v2  ;;  %v404_v23 = vmul.f32 %v400_v11, %v2884_v3  ;;  %v387_v24 = vrot.slane %v379_v16, 1  ;;  %v388_v25 = vrot.slane %v380_v17, 1 }
  0x94   : > { %v389_v26 = vrot.slane %v381_v18, 1  ;;  %v390_v27 = vrot.slane %v382_v19, 1  ;;  %v409_v28 = vrot.slane %v401_v20, 2  ;;  %v410_v29 = vrot.slane %v402_v21, 2 }
  0x95   : > { %v411_v30 = vrot.slane %v403_v22, 2  ;;  %v412_v31 = vrot.slane %v404_v23, 2  ;;  %v395_v32 = vadd.f32 %v387_v24, %v373_v12  ;;  %v396_v33 = vadd.f32 %v388_v25, %v374_v13 }
  0x96   : > { %v397_v34 = vadd.f32 %v389_v26, %v375_v14  ;;  %v398_v35 = vadd.f32 %v390_v27, %v376_v15  ;;  %v422_v36 = vstv %s2886_s13  ;;  %v444_v37 = vstv %s2888_s25  ;;  %s2976_s13 = sld [smem:[#allocation8 + $0x87]]  ;;  %s2980_s25 = sld [smem:[#allocation8 + $0x100]] }
  0x97   : > { %v466_v38 = vstv %s2894_s18  ;;  %v488_v39 = vstv %s2896_s12  ;;  %v417_v40 = vadd.f32 %v409_v28, %v395_v32  ;;  %v418_v41 = vadd.f32 %v410_v29, %v396_v33  ;;  %s2982_s18 = sld [smem:[#allocation9 + $0x2]]  ;;  %s2994_s12 = sld [smem:[#allocation8 + $0x101]] }
  0x98   : > { %v419_v42 = vadd.f32 %v411_v30, %v397_v34  ;;  %v420_v43 = vadd.f32 %v412_v31, %v398_v35  ;;  %v423_v44 = vmul.f32 %v422_v36, %v2875_v0  ;;  %v424_v45 = vmul.f32 %v422_v36, %v2878_v1 }
  0x99   : > { %v425_v46 = vmul.f32 %v422_v36, %v2881_v2  ;;  %v426_v47 = vmul.f32 %v422_v36, %v2884_v3  ;;  %v445_v48 = vmul.f32 %v444_v37, %v2875_v0  ;;  %v446_v49 = vmul.f32 %v444_v37, %v2878_v1 }
  0x9a   : > { %v447_v50 = vmul.f32 %v444_v37, %v2881_v2  ;;  %v448_v51 = vmul.f32 %v444_v37, %v2884_v3  ;;  %v431_v52 = vrot.slane %v423_v44, 3  ;;  %v432_v53 = vrot.slane %v424_v45, 3 }
  0x9b   : > { %v433_v54 = vrot.slane %v425_v46, 3  ;;  %v434_v55 = vrot.slane %v426_v47, 3  ;;  %v453_v56 = vrot.slane %v445_v48, 4  ;;  %v454_v57 = vrot.slane %v446_v49, 4 }
  0x9c   : > { %v455_v58 = vrot.slane %v447_v50, 4  ;;  %v456_v59 = vrot.slane %v448_v51, 4  ;;  %v439_v60 = vadd.f32 %v431_v52, %v417_v40  ;;  %v440_v61 = vadd.f32 %v432_v53, %v418_v41 }
  0x9d   : > { %v441_v62 = vadd.f32 %v433_v54, %v419_v42  ;;  %v442_v63 = vadd.f32 %v434_v55, %v420_v43  ;;  %v467_v4 = vmul.f32 %v466_v38, %v2875_v0  ;;  %v468_v5 = vmul.f32 %v466_v38, %v2878_v1 }
  0x9e   : > { %v469_v6 = vmul.f32 %v466_v38, %v2881_v2  ;;  %v470_v7 = vmul.f32 %v466_v38, %v2884_v3  ;;  %v461_v8 = vadd.f32 %v453_v56, %v439_v60  ;;  %v462_v9 = vadd.f32 %v454_v57, %v440_v61 }
  0x9f   : > { %v463_v10 = vadd.f32 %v455_v58, %v441_v62  ;;  %v464_v11 = vadd.f32 %v456_v59, %v442_v63  ;;  %v475_v12 = vrot.slane %v467_v4, 5  ;;  %v476_v13 = vrot.slane %v468_v5, 5 }
  0xa0   : > { %v477_v14 = vrot.slane %v469_v6, 5  ;;  %v478_v15 = vrot.slane %v470_v7, 5  ;;  %v489_v16 = vmul.f32 %v488_v39, %v2875_v0  ;;  %v490_v17 = vmul.f32 %v488_v39, %v2878_v1 }
  0xa1   : > { %v491_v18 = vmul.f32 %v488_v39, %v2881_v2  ;;  %v492_v19 = vmul.f32 %v488_v39, %v2884_v3  ;;  %v483_v20 = vadd.f32 %v475_v12, %v461_v8  ;;  %v484_v21 = vadd.f32 %v476_v13, %v462_v9 }
  0xa2   : > { %v485_v22 = vadd.f32 %v477_v14, %v463_v10  ;;  %v486_v23 = vadd.f32 %v478_v15, %v464_v11  ;;  %v497_v24 = vrot.slane %v489_v16, 6  ;;  %v498_v25 = vrot.slane %v490_v17, 6 }
  0xa3   : > { %v499_v26 = vrot.slane %v491_v18, 6  ;;  %v500_v27 = vrot.slane %v492_v19, 6  ;;  %v510_v28 = vstv %s2918_s19  ;;  %v552_v29 = vstv %s2920_s23  ;;  %s2996_s19 = sld [smem:[#allocation8 + $0x102]]  ;;  %s2999_s23 = sld [smem:[#allocation8 + $0x103]] }
  0xa4   : > { %v558_v30 = vstv %s2922_s17  ;;  %v564_v31 = vstv %s2924_s6  ;;  %v505_v32 = vadd.f32 %v497_v24, %v483_v20  ;;  %v506_v33 = vadd.f32 %v498_v25, %v484_v21  ;;  %s3023_s17 = sld [smem:[#allocation8 + $0x104]]  ;;  %s3029_s6 = sld [smem:[#allocation8 + $0x105]] }
  0xa5   : > { %v507_v34 = vadd.f32 %v499_v26, %v485_v22  ;;  %v508_v35 = vadd.f32 %v500_v27, %v486_v23  ;;  %v511_v36 = vmul.f32 %v510_v28, %v2875_v0  ;;  %v512_v37 = vmul.f32 %v510_v28, %v2878_v1 }
  0xa6   : > { %v513_v38 = vmul.f32 %v510_v28, %v2881_v2  ;;  %v514_v39 = vmul.f32 %v510_v28, %v2884_v3  ;;  %v553_v40 = vmul.f32 %v552_v29, %v2875_v0  ;;  %v554_v41 = vmul.f32 %v552_v29, %v2878_v1 }
  0xa7   : > { %v555_v42 = vmul.f32 %v552_v29, %v2881_v2  ;;  %v556_v43 = vmul.f32 %v552_v29, %v2884_v3  ;;  %v519_v44 = vrot.slane %v511_v36, 7  ;;  %v520_v45 = vrot.slane %v512_v37, 7 }
  0xa8   : > { %v521_v46 = vrot.slane %v513_v38, 7  ;;  %v522_v47 = vrot.slane %v514_v39, 7  ;;  %v559_v48 = vadd.f32 %v558_v30, %v553_v40  ;;  %v560_v49 = vadd.f32 %v558_v30, %v554_v41 }
  0xa9   : > { %v561_v50 = vadd.f32 %v558_v30, %v555_v42  ;;  %v562_v51 = vadd.f32 %v558_v30, %v556_v43  ;;  %v527_v52 = vadd.f32 %v519_v44, %v505_v32  ;;  %v528_v53 = vadd.f32 %v520_v45, %v506_v33 }
  0xaa   : > { %v529_v54 = vadd.f32 %v521_v46, %v507_v34  ;;  %v530_v55 = vadd.f32 %v522_v47, %v508_v35  ;;  %v565_v56 = vmul.f32 %v564_v31, %v2875_v0  ;;  %v566_v57 = vmul.f32 %v564_v31, %v2878_v1 }
  0xab   : > { %v567_v58 = vmul.f32 %v564_v31, %v2881_v2  ;;  %v568_v59 = vmul.f32 %v564_v31, %v2884_v3  ;;  %v531_v60 = vsub.f32 0.0, %v527_v52  ;;  %v532_v61 = vsub.f32 0.0, %v528_v53 }
  0xac   : > { %v533_v62 = vsub.f32 0.0, %v529_v54  ;;  %v534_v63 = vsub.f32 0.0, %v530_v55  ;;  %v573_v4 = vrot.slane %v565_v56, 1  ;;  %v574_v5 = vrot.slane %v566_v57, 1 }
  0xad   : > { %v575_v6 = vrot.slane %v567_v58, 1  ;;  %v576_v7 = vrot.slane %v568_v59, 1  ;;  %v535_v8 = vmul.f32 1.442695, %v531_v60  ;;  %v537_v9 = vmul.f32 1.442695, %v532_v61 }
  0xae   : > { %v539_v10 = vmul.f32 1.442695, %v533_v62  ;;  %v586_v11 = vstv %s2942_s15  ;;  %v541_v12 = vmul.f32 1.442695, %v534_v63  ;;  %v581_v13 = vadd.f32 %v573_v4, %v559_v48  ;;  %s3031_s15 = sld [smem:[#allocation8 + $0x106]] }
  0xaf   : > { %v582_v14 = vadd.f32 %v574_v5, %v560_v49  ;;  %v583_v15 = vadd.f32 %v575_v6, %v561_v50  ;;  %2248 = vpow2.f32 %v535_v8  ;;  %v584_v16 = vadd.f32 %v576_v7, %v562_v51 }
  0xb0   : > { %v587_v17 = vmul.f32 %v586_v11, %v2875_v0  ;;  %v588_v18 = vmul.f32 %v586_v11, %v2878_v1  ;;  %2250 = vpow2.f32 %v537_v9  ;;  %v589_v19 = vmul.f32 %v586_v11, %v2881_v2 }
  0xb1   : > { %v590_v20 = vmul.f32 %v586_v11, %v2884_v3  ;;  %v608_v21 = vstv %s2948_s10  ;;  %2252 = vpow2.f32 %v539_v10  ;;  %v630_v38 = vstv %s2954_s11  ;;  %s3044_s10 = sld [smem:[#allocation8 + $0x107]]  ;;  %s3046_s11 = sld [smem:[#allocation8 + $0x180]] }
  0xb2   : > { %v595_v22 = vrot.slane %v587_v17, 2  ;;  %v596_v23 = vrot.slane %v588_v18, 2  ;;  %v609_v24 = vmul.f32 %v608_v21, %v2875_v0  ;;  %2254 = vpow2.f32 %v541_v12 }
  0xb3   : > { %v597_v25 = vrot.slane %v589_v19, 2  ;;  %v598_v26 = vrot.slane %v590_v20, 2  ;;  %v610_v27 = vmul.f32 %v608_v21, %v2878_v1  ;;  %v611_v30 = vmul.f32 %v608_v21, %v2881_v2 }
  0xb4   : > { %v603_v28 = vadd.f32 %v595_v22, %v581_v13  ;;  %v604_v29 = vadd.f32 %v596_v23, %v582_v14  ;;  %v612_v31 = vmul.f32 %v608_v21, %v2884_v3  ;;  %v617_v34 = vrot.slane %v609_v24, 3 }
  0xb5   : > { %v605_v32 = vadd.f32 %v597_v25, %v583_v15  ;;  %v606_v33 = vadd.f32 %v598_v26, %v584_v16  ;;  %v618_v35 = vrot.slane %v610_v27, 3  ;;  %v619_v36 = vrot.slane %v611_v30, 3 }
  0xb6   : > { %v620_v37 = vrot.slane %v612_v31, 3  ;;  %v652_v39 = vstv %s2956_s21  ;;  %v625_v40 = vadd.f32 %v617_v34, %v603_v28  ;;  %v631_v42 = vmul.f32 %v630_v38, %v2875_v0  ;;  %s3054_s21 = sld [smem:[#allocation9 + $0x3]] }
  0xb7   : > { %v626_v41 = vadd.f32 %v618_v35, %v604_v29  ;;  %v632_v43 = vmul.f32 %v630_v38, %v2878_v1  ;;  %v627_v44 = vadd.f32 %v619_v36, %v605_v32  ;;  %v633_v46 = vmul.f32 %v630_v38, %v2881_v2 }
  0xb8   : > { %v628_v45 = vadd.f32 %v620_v37, %v606_v33  ;;  %v634_v47 = vmul.f32 %v630_v38, %v2884_v3  ;;  %v639_v48 = vrot.slane %v631_v42, 4  ;;  %v653_v50 = vmul.f32 %v652_v39, %v2875_v0 }
  0xb9   : > { %v640_v49 = vrot.slane %v632_v43, 4  ;;  %v654_v51 = vmul.f32 %v652_v39, %v2878_v1  ;;  %v2249_v52 = vpop.eup %2248  ;;  %v641_v53 = vrot.slane %v633_v46, 4  ;;  %v655_v55 = vmul.f32 %v652_v39, %v2881_v2 }
  0xba   : > { %v642_v54 = vrot.slane %v634_v47, 4  ;;  %v656_v56 = vmul.f32 %v652_v39, %v2884_v3  ;;  %v2251_v57 = vpop.eup %2250  ;;  %v543_v58 = vadd.f32 1.0, %v2249_v52  ;;  %v647_v59 = vadd.f32 %v639_v48, %v625_v40 }
  0xbb   : > { %v648_v60 = vadd.f32 %v640_v49, %v626_v41  ;;  %v661_v61 = vrot.slane %v653_v50, 5  ;;  %v2253_v62 = vpop.eup %2252  ;;  %v544_v63 = vadd.f32 1.0, %v2251_v57  ;;  %v649_v4 = vadd.f32 %v641_v53, %v627_v44 }
  0xbc   : > { %v650_v5 = vadd.f32 %v642_v54, %v628_v45  ;;  %v662_v6 = vrot.slane %v654_v51, 5  ;;  %v2255_v7 = vpop.eup %2254  ;;  %v545_v8 = vadd.f32 1.0, %v2253_v62  ;;  %2256 = vrcp.f32 %v543_v58 }
  0xbd   : > { %v663_v9 = vrot.slane %v655_v55, 5  ;;  %v664_v10 = vrot.slane %v656_v56, 5  ;;  %v546_v11 = vadd.f32 1.0, %v2255_v7  ;;  %2258 = vrcp.f32 %v544_v63 }
  0xbe   : > { %v669_v12 = vadd.f32 %v661_v61, %v647_v59  ;;  %v670_v13 = vadd.f32 %v662_v6, %v648_v60  ;;  %2260 = vrcp.f32 %v545_v8  ;;  %v674_v16 = vstv %s2972_s24  ;;  %s3056_s24 = sld [smem:[#allocation8 + $0x181]] }
  0xbf   : > { %v671_v14 = vadd.f32 %v663_v9, %v649_v4  ;;  %v672_v15 = vadd.f32 %v664_v10, %v650_v5  ;;  %2262 = vrcp.f32 %v546_v11  ;;  %v675_v17 = vmul.f32 %v674_v16, %v2875_v0 }
  0xc0   : > { %v676_v18 = vmul.f32 %v674_v16, %v2878_v1  ;;  %v677_v19 = vmul.f32 %v674_v16, %v2881_v2  ;;  %v678_v20 = vmul.f32 %v674_v16, %v2884_v3  ;;  %v696_v21 = vstv %s2976_s13  ;;  %s3059_s13 = sld [smem:[#allocation8 + $0x182]] }
  0xc1   : > { %v738_v22 = vstv %s2980_s25  ;;  %v744_v23 = vstv %s2982_s18  ;;  %v683_v24 = vrot.slane %v675_v17, 6  ;;  %v697_v27 = vmul.f32 %v696_v21, %v2875_v0  ;;  %s3083_s25 = sld [smem:[#allocation8 + $0x183]]  ;;  %s3085_s18 = sld [smem:[#allocation8 + $0x184]] }
  0xc2   : > { %v684_v25 = vrot.slane %v676_v18, 6  ;;  %v685_v26 = vrot.slane %v677_v19, 6  ;;  %v686_v28 = vrot.slane %v678_v20, 6  ;;  %v698_v29 = vmul.f32 %v696_v21, %v2878_v1 }
  0xc3   : > { %v699_v30 = vmul.f32 %v696_v21, %v2881_v2  ;;  %v700_v31 = vmul.f32 %v696_v21, %v2884_v3  ;;  %v691_v32 = vadd.f32 %v683_v24, %v669_v12  ;;  %v705_v35 = vrot.slane %v697_v27, 7 }
  0xc4   : > { %v692_v33 = vadd.f32 %v684_v25, %v670_v13  ;;  %v693_v34 = vadd.f32 %v685_v26, %v671_v14  ;;  %v694_v36 = vadd.f32 %v686_v28, %v672_v15  ;;  %v706_v37 = vrot.slane %v698_v29, 7 }
  0xc5   : > { %v707_v38 = vrot.slane %v699_v30, 7  ;;  %v708_v39 = vrot.slane %v700_v31, 7  ;;  %v713_v40 = vadd.f32 %v705_v35, %v691_v32  ;;  %v739_v41 = vmul.f32 %v738_v22, %v2875_v0 }
  0xc6   : > { %v740_v42 = vmul.f32 %v738_v22, %v2878_v1  ;;  %v741_v43 = vmul.f32 %v738_v22, %v2881_v2  ;;  %v3007_v44 = vpop.eup %2256  ;;  %v714_v45 = vadd.f32 %v706_v37, %v692_v33  ;;  %v742_v48 = vmul.f32 %v738_v22, %v2884_v3 }
  0xc7   : > { %v715_v46 = vadd.f32 %v707_v38, %v693_v34  ;;  %v716_v47 = vadd.f32 %v708_v39, %v694_v36  ;;  %v3010_v49 = vpop.eup %2258  ;;  %v717_v50 = vsub.f32 0.0, %v713_v40  ;;  %v745_v51 = vadd.f32 %v744_v23, %v739_v41 }
  0xc8   : > { %v746_v52 = vadd.f32 %v744_v23, %v740_v42  ;;  %v747_v53 = vadd.f32 %v744_v23, %v741_v43  ;;  %v3012_v54 = vpop.eup %2260  ;;  %v718_v55 = vsub.f32 0.0, %v714_v45  ;;  %v748_v58 = vadd.f32 %v744_v23, %v742_v48 }
  0xc9   : > { %v719_v56 = vsub.f32 0.0, %v715_v46  ;;  %v720_v57 = vsub.f32 0.0, %v716_v47  ;;  %v3014_v59 = vpop.eup %2262  ;;  %v721_v60 = vmul.f32 1.442695, %v717_v50  ;;  %v750_v61 = vstv %s2994_s12  ;;  %s3095_s12 = sld [smem:[#allocation8 + $0x185]] }
  0xca   : > { %v772_v62 = vstv %s2996_s19  ;;  %v794_v63 = vstv %s2999_s23  ;;  %v723_v4 = vmul.f32 1.442695, %v718_v55  ;;  %v751_v7 = vmul.f32 %v750_v61, %v2875_v0  ;;  %s3104_s19 = sld [smem:[#allocation8 + $0x186]]  ;;  %s3110_s23 = sld [smem:[#allocation8 + $0x187]] }
  0xcb   : > { %v725_v5 = vmul.f32 1.442695, %v719_v56  ;;  %v727_v6 = vmul.f32 1.442695, %v720_v57  ;;  %2264 = vpow2.f32 %v721_v60  ;;  %v752_v8 = vmul.f32 %v750_v61, %v2878_v1 }
  0xcc   : > { %v753_v9 = vmul.f32 %v750_v61, %v2881_v2  ;;  %v754_v10 = vmul.f32 %v750_v61, %v2884_v3  ;;  %2266 = vpow2.f32 %v723_v4  ;;  %v759_v11 = vrot.slane %v751_v7, 1 }
  0xcd   : > { %v773_v12 = vmul.f32 %v772_v62, %v2875_v0  ;;  %v774_v13 = vmul.f32 %v772_v62, %v2878_v1  ;;  %2268 = vpow2.f32 %v725_v5  ;;  %v760_v14 = vrot.slane %v752_v8, 1 }
  0xce   : > { %v761_v15 = vrot.slane %v753_v9, 1  ;;  %v762_v16 = vrot.slane %v754_v10, 1  ;;  %2270 = vpow2.f32 %v727_v6  ;;  %v767_v17 = vadd.f32 %v759_v11, %v745_v51 }
  0xcf   : > { %v775_v18 = vmul.f32 %v772_v62, %v2881_v2  ;;  %v776_v19 = vmul.f32 %v772_v62, %v2884_v3  ;;  %v768_v20 = vadd.f32 %v760_v14, %v746_v52  ;;  %v781_v23 = vrot.slane %v773_v12, 2 }
  0xd0   : > { %v769_v21 = vadd.f32 %v761_v15, %v747_v53  ;;  %v770_v22 = vadd.f32 %v762_v16, %v748_v58  ;;  %v782_v24 = vrot.slane %v774_v13, 2  ;;  %v795_v27 = vmul.f32 %v794_v63, %v2875_v0 }
  0xd1   : > { %v783_v25 = vrot.slane %v775_v18, 2  ;;  %v784_v26 = vrot.slane %v776_v19, 2  ;;  %v789_v28 = vadd.f32 %v781_v23, %v767_v17  ;;  %v796_v29 = vmul.f32 %v794_v63, %v2878_v1 }
  0xd2   : > { %v797_v30 = vmul.f32 %v794_v63, %v2881_v2  ;;  %v798_v31 = vmul.f32 %v794_v63, %v2884_v3  ;;  %v790_v32 = vadd.f32 %v782_v24, %v768_v20  ;;  %v803_v35 = vrot.slane %v795_v27, 3 }
  0xd3   : > { %v791_v33 = vadd.f32 %v783_v25, %v769_v21  ;;  %v792_v34 = vadd.f32 %v784_v26, %v770_v22  ;;  %v804_v36 = vrot.slane %v796_v29, 3  ;;  %v816_v39 = vstv %s3023_s17  ;;  %s3112_s17 = sld [smem:[#allocation8 + $0x200]] }
  0xd4   : > { %v805_v37 = vrot.slane %v797_v30, 3  ;;  %v806_v38 = vrot.slane %v798_v31, 3  ;;  %v811_v40 = vadd.f32 %v803_v35, %v789_v28  ;;  %v817_v41 = vmul.f32 %v816_v39, %v2875_v0 }
  0xd5   : > { %v818_v42 = vmul.f32 %v816_v39, %v2878_v1  ;;  %v819_v43 = vmul.f32 %v816_v39, %v2881_v2  ;;  %v2265_v45 = vpop.eup %2264  ;;  %v812_v46 = vadd.f32 %v804_v36, %v790_v32  ;;  %v820_v50 = vmul.f32 %v816_v39, %v2884_v3 }
  0xd6   : > { %v813_v47 = vadd.f32 %v805_v37, %v791_v33  ;;  %v814_v48 = vadd.f32 %v806_v38, %v792_v34  ;;  %v2267_v51 = vpop.eup %2266  ;;  %v729_v52 = vadd.f32 1.0, %v2265_v45  ;;  %v825_v53 = vrot.slane %v817_v41, 4 }
  0xd7   : > { %v826_v55 = vrot.slane %v818_v42, 4  ;;  %v827_v56 = vrot.slane %v819_v43, 4  ;;  %v2269_v57 = vpop.eup %2268  ;;  %v730_v58 = vadd.f32 1.0, %v2267_v51  ;;  %v828_v60 = vrot.slane %v820_v50, 4 }
  0xd8   : > { %v838_v61 = vstv %s3029_s6  ;;  %v860_v62 = vstv %s3031_s15  ;;  %v2271_v63 = vpop.eup %2270  ;;  %v731_v4 = vadd.f32 1.0, %v2269_v57  ;;  %2272 = vrcp.f32 %v729_v52  ;;  %s3120_s6 = sld [smem:[#allocation9 + $0x4]]  ;;  %s3127_s15 = sld [smem:[#allocation8 + $0x201]] }
  0xd9   : > { %v833_v5 = vadd.f32 %v825_v53, %v811_v40  ;;  %v834_v6 = vadd.f32 %v826_v55, %v812_v46  ;;  %v732_v7 = vadd.f32 1.0, %v2271_v63  ;;  %2274 = vrcp.f32 %v730_v58 }
  0xda   : > { %v835_v8 = vadd.f32 %v827_v56, %v813_v47  ;;  %v836_v9 = vadd.f32 %v828_v60, %v814_v48  ;;  %2276 = vrcp.f32 %v731_v4  ;;  %v839_v10 = vmul.f32 %v838_v61, %v2875_v0 }
  0xdb   : > { %v840_v11 = vmul.f32 %v838_v61, %v2878_v1  ;;  %v841_v12 = vmul.f32 %v838_v61, %v2881_v2  ;;  %2278 = vrcp.f32 %v732_v7  ;;  %v842_v13 = vmul.f32 %v838_v61, %v2884_v3 }
  0xdc   : > { %v861_v14 = vmul.f32 %v860_v62, %v2875_v0  ;;  %v862_v15 = vmul.f32 %v860_v62, %v2878_v1  ;;  %v847_v16 = vrot.slane %v839_v10, 5  ;;  %v863_v19 = vmul.f32 %v860_v62, %v2881_v2 }
  0xdd   : > { %v848_v17 = vrot.slane %v840_v11, 5  ;;  %v849_v18 = vrot.slane %v841_v12, 5  ;;  %v850_v20 = vrot.slane %v842_v13, 5  ;;  %v864_v21 = vmul.f32 %v860_v62, %v2884_v3 }
  0xde   : > { %v869_v22 = vrot.slane %v861_v14, 6  ;;  %v870_v23 = vrot.slane %v862_v15, 6  ;;  %v855_v24 = vadd.f32 %v847_v16, %v833_v5  ;;  %v871_v27 = vrot.slane %v863_v19, 6 }
  0xdf   : > { %v856_v25 = vadd.f32 %v848_v17, %v834_v6  ;;  %v857_v26 = vadd.f32 %v849_v18, %v835_v8  ;;  %v858_v28 = vadd.f32 %v850_v20, %v836_v9  ;;  %v872_v29 = vrot.slane %v864_v21, 6 }
  0xe0   : > { %v882_v30 = vstv %s3044_s10  ;;  %v924_v31 = vstv %s3046_s11  ;;  %v877_v32 = vadd.f32 %v869_v22, %v855_v24  ;;  %v930_v55 = vstv %s3054_s21  ;;  %s3129_s10 = sld [smem:[#allocation8 + $0x202]]  ;;  %s3168_s11 = sld [smem:[#allocation8 + $0x204]] }
  0xe1   : > { %v878_v33 = vadd.f32 %v870_v23, %v856_v25  ;;  %v879_v34 = vadd.f32 %v871_v27, %v857_v26  ;;  %v883_v35 = vmul.f32 %v882_v30, %v2875_v0  ;;  %v880_v36 = vadd.f32 %v872_v29, %v858_v28  ;;  %s3171_s21 = sld [smem:[#allocation8 + $0x205]] }
  0xe2   : > { %v884_v37 = vmul.f32 %v882_v30, %v2878_v1  ;;  %v885_v38 = vmul.f32 %v882_v30, %v2881_v2  ;;  %v886_v39 = vmul.f32 %v882_v30, %v2884_v3  ;;  %v3068_v40 = vpop.eup %2272  ;;  %v925_v42 = vmul.f32 %v924_v31, %v2875_v0 }
  0xe3   : > { %v891_v41 = vrot.slane %v883_v35, 7  ;;  %v926_v43 = vmul.f32 %v924_v31, %v2878_v1  ;;  %v927_v45 = vmul.f32 %v924_v31, %v2881_v2  ;;  %v3073_v46 = vpop.eup %2274  ;;  %v928_v51 = vmul.f32 %v924_v31, %v2884_v3 }
  0xe4   : > { %v892_v47 = vrot.slane %v884_v37, 7  ;;  %v893_v48 = vrot.slane %v885_v38, 7  ;;  %v894_v50 = vrot.slane %v886_v39, 7  ;;  %v3076_v52 = vpop.eup %2276  ;;  %v936_v56 = vstv %s3056_s24  ;;  %s3173_s24 = sld [smem:[#allocation8 + $0x206]] }
  0xe5   : > { %v899_v53 = vadd.f32 %v891_v41, %v877_v32  ;;  %v958_v57 = vstv %s3059_s13  ;;  %v3081_v58 = vpop.eup %2278  ;;  %v931_v63 = vadd.f32 %v930_v55, %v925_v42  ;;  %v932_v5 = vadd.f32 %v930_v55, %v926_v43  ;;  %s3192_s13 = sld [smem:[#allocation8 + $0x207]] }
  0xe6   : > { %v900_v60 = vadd.f32 %v892_v47, %v878_v33  ;;  %v901_v61 = vadd.f32 %v893_v48, %v879_v34  ;;  %v902_v62 = vadd.f32 %v894_v50, %v880_v36  ;;  %v933_v6 = vadd.f32 %v930_v55, %v927_v45 }
  0xe7   : > { %v903_v4 = vsub.f32 0.0, %v899_v53  ;;  %v934_v7 = vadd.f32 %v930_v55, %v928_v51  ;;  %v937_v11 = vmul.f32 %v936_v56, %v2875_v0  ;;  %v938_v13 = vmul.f32 %v936_v56, %v2878_v1 }
  0xe8   : > { %v904_v8 = vsub.f32 0.0, %v900_v60  ;;  %v905_v9 = vsub.f32 0.0, %v901_v61  ;;  %v906_v10 = vsub.f32 0.0, %v902_v62  ;;  %v939_v14 = vmul.f32 %v936_v56, %v2881_v2 }
  0xe9   : > { %v907_v12 = vmul.f32 1.442695, %v903_v4  ;;  %v940_v15 = vmul.f32 %v936_v56, %v2884_v3  ;;  %v959_v19 = vmul.f32 %v958_v57, %v2875_v0  ;;  %v945_v20 = vrot.slane %v937_v11, 1 }
  0xea   : > { %v909_v16 = vmul.f32 1.442695, %v904_v8  ;;  %v911_v17 = vmul.f32 1.442695, %v905_v9  ;;  %v913_v18 = vmul.f32 1.442695, %v906_v10  ;;  %v960_v24 = vmul.f32 %v958_v57, %v2878_v1 }
  0xeb   : > { %2280 = vpow2.f32 %v907_v12  ;;  %v946_v21 = vrot.slane %v938_v13, 1  ;;  %v947_v22 = vrot.slane %v939_v14, 1  ;;  %v948_v23 = vrot.slane %v940_v15, 1 }
  0xec   : > { %2282 = vpow2.f32 %v909_v16  ;;  %v961_v25 = vmul.f32 %v958_v57, %v2881_v2  ;;  %v953_v26 = vadd.f32 %v945_v20, %v931_v63  ;;  %v962_v30 = vmul.f32 %v958_v57, %v2884_v3 }
  0xed   : > { %2284 = vpow2.f32 %v911_v17  ;;  %v954_v27 = vadd.f32 %v946_v21, %v932_v5  ;;  %v955_v28 = vadd.f32 %v947_v22, %v933_v6  ;;  %v956_v29 = vadd.f32 %v948_v23, %v934_v7 }
  0xee   : > { %2286 = vpow2.f32 %v913_v18  ;;  %v967_v31 = vrot.slane %v959_v19, 2  ;;  %v968_v32 = vrot.slane %v960_v24, 2  ;;  %v969_v33 = vrot.slane %v961_v25, 2 }
  0xef   : > { %v980_v34 = vstv %s3083_s25  ;;  %v1002_v35 = vstv %s3085_s18  ;;  %v970_v36 = vrot.slane %v962_v30, 2  ;;  %v1024_v13 = vstv %s3095_s12  ;;  %s3195_s25 = sld [smem:[#allocation8 + $0x280]]  ;;  %s3201_s18 = sld [smem:[#allocation9 + $0x5]] }
  0xf0   : > { %v975_v37 = vadd.f32 %v967_v31, %v953_v26  ;;  %v981_v38 = vmul.f32 %v980_v34, %v2875_v0  ;;  %v982_v39 = vmul.f32 %v980_v34, %v2878_v1  ;;  %v976_v41 = vadd.f32 %v968_v32, %v954_v27  ;;  %s3203_s12 = sld [smem:[#allocation8 + $0x281]] }
  0xf1   : > { %v977_v42 = vadd.f32 %v969_v33, %v955_v28  ;;  %v983_v43 = vmul.f32 %v980_v34, %v2881_v2  ;;  %v984_v45 = vmul.f32 %v980_v34, %v2884_v3  ;;  %v978_v47 = vadd.f32 %v970_v36, %v956_v29 }
  0xf2   : > { %v989_v48 = vrot.slane %v981_v38, 3  ;;  %v990_v50 = vrot.slane %v982_v39, 3  ;;  %v1003_v51 = vmul.f32 %v1002_v35, %v2875_v0  ;;  %v1004_v56 = vmul.f32 %v1002_v35, %v2878_v1 }
  0xf3   : > { %v991_v53 = vrot.slane %v983_v43, 3  ;;  %v992_v55 = vrot.slane %v984_v45, 3  ;;  %v1005_v57 = vmul.f32 %v1002_v35, %v2881_v2  ;;  %v1006_v62 = vmul.f32 %v1002_v35, %v2884_v3 }
  0xf4   : > { %v997_v60 = vadd.f32 %v989_v48, %v975_v37  ;;  %v998_v61 = vadd.f32 %v990_v50, %v976_v41  ;;  %v1011_v63 = vrot.slane %v1003_v51, 4  ;;  %v1012_v7 = vrot.slane %v1004_v56, 4  ;;  %v3138_v56 = vld [vmem:[%s2852_s8 + $0x18] sm:$0xff] }
  0xf5   : > { %v2281_v4 = vpop.eup %2280  ;;  %v999_v5 = vadd.f32 %v991_v53, %v977_v42  ;;  %v1000_v6 = vadd.f32 %v992_v55, %v978_v47  ;;  %v1013_v8 = vrot.slane %v1005_v57, 4  ;;  %v1014_v11 = vrot.slane %v1006_v62, 4  ;;  %v3134_v53 = vld [vmem:[%s2852_s8 + $0x10] sm:$0xff] }
  0xf6   : > { %v2283_v9 = vpop.eup %2282  ;;  %v915_v10 = vadd.f32 1.0, %v2281_v4  ;;  %v1019_v12 = vadd.f32 %v1011_v63, %v997_v60  ;;  %v1020_v16 = vadd.f32 %v1012_v7, %v998_v61  ;;  %v1025_v18 = vmul.f32 %v1024_v13, %v2875_v0  ;;  %v3142_v63 = vld [vmem:[%s2852_s8] sm:$0xff] }
  0xf7   : > { %v2285_v14 = vpop.eup %2284  ;;  %v916_v15 = vadd.f32 1.0, %v2283_v9  ;;  %v1021_v17 = vadd.f32 %v1013_v8, %v999_v5  ;;  %v1022_v21 = vadd.f32 %v1014_v11, %v1000_v6  ;;  %v1026_v22 = vmul.f32 %v1024_v13, %v2878_v1  ;;  %v3148_v6 = vld [vmem:[%s2852_s8 + $0x8] sm:$0xff]  ;;  %s3160_s8 = sld [smem:[#allocation8 + $0x203]] }
  0xf8   : > { %v2287_v19 = vpop.eup %2286  ;;  %v917_v20 = vadd.f32 1.0, %v2285_v14  ;;  %2288 = vrcp.f32 %v915_v10  ;;  %v1027_v24 = vmul.f32 %v1024_v13, %v2881_v2  ;;  %v1028_v25 = vmul.f32 %v1024_v13, %v2884_v3 }
  0xf9   : > { %v918_v23 = vadd.f32 1.0, %v2287_v19  ;;  %2290 = vrcp.f32 %v916_v15  ;;  %v1033_v26 = vrot.slane %v1025_v18, 5  ;;  %v1034_v27 = vrot.slane %v1026_v22, 5 }
  0xfa   : > { %2292 = vrcp.f32 %v917_v20  ;;  %v1046_v28 = vstv %s3104_s19  ;;  %v1035_v29 = vrot.slane %v1027_v24, 5  ;;  %v1036_v30 = vrot.slane %v1028_v25, 5  ;;  %s3212_s19 = sld [smem:[#allocation8 + $0x282]] }
  0xfb   : > { %2294 = vrcp.f32 %v918_v23  ;;  %v1047_v31 = vmul.f32 %v1046_v28, %v2875_v0  ;;  %v1041_v32 = vadd.f32 %v1033_v26, %v1019_v12  ;;  %v1042_v33 = vadd.f32 %v1034_v27, %v1020_v16 }
  0xfc   : > { %v1048_v34 = vmul.f32 %v1046_v28, %v2878_v1  ;;  %v1049_v35 = vmul.f32 %v1046_v28, %v2881_v2  ;;  %v1043_v36 = vadd.f32 %v1035_v29, %v1021_v17  ;;  %v1044_v37 = vadd.f32 %v1036_v30, %v1022_v21 }
  0xfd   : > { %v1050_v38 = vmul.f32 %v1046_v28, %v2884_v3  ;;  %v1055_v39 = vrot.slane %v1047_v31, 6  ;;  %v1068_v43 = vstv %s3110_s23  ;;  %v1110_v45 = vstv %s3112_s17  ;;  %s3228_s23 = sld [smem:[#allocation8 + $0x283]]  ;;  %s3235_s17 = sld [smem:[#allocation8 + $0x284]] }
  0xfe   : > { %v1056_v41 = vrot.slane %v1048_v34, 6  ;;  %v1057_v42 = vrot.slane %v1049_v35, 6  ;;  %v1069_v2 = vmul.f32 %v1068_v43, %v2875_v0  ;;  %v1070_v50 = vmul.f32 %v1068_v43, %v2878_v1 }
  0xff   : > { %v1058_v47 = vrot.slane %v1050_v38, 6  ;;  %v1063_v48 = vadd.f32 %v1055_v39, %v1041_v32  ;;  %v1071_v55 = vmul.f32 %v3134_v53, %v1068_v43  ;;  %v1072_v57 = vmul.f32 %v3138_v56, %v1068_v43 }
 0x100   : > { %v1064_v51 = vadd.f32 %v1056_v41, %v1042_v33  ;;  %v1065_v3 = vadd.f32 %v1057_v42, %v1043_v36  ;;  %v1077_v61 = vrot.slane %v1069_v2, 7  ;;  %v1078_v62 = vrot.slane %v1070_v50, 7 }
 0x101   : > { %v1066_v60 = vadd.f32 %v1058_v47, %v1044_v37  ;;  %v1111_v0 = vmul.f32 %v3142_v63, %v1110_v45  ;;  %v1079_v1 = vrot.slane %v1071_v55, 7  ;;  %v1080_v5 = vrot.slane %v1072_v57, 7 }
 0x102   : > { %v3145_v4 = vpop.eup %2288  ;;  %v1112_v7 = vmul.f32 %v3148_v6, %v1110_v45  ;;  %v1113_v8 = vmul.f32 %v3134_v53, %v1110_v45  ;;  %v1085_v10 = vadd.f32 %v1077_v61, %v1063_v48  ;;  %v1086_v11 = vadd.f32 %v1078_v62, %v1064_v51 }
 0x103   : > { %v3152_v9 = vpop.eup %2290  ;;  %v1114_v12 = vmul.f32 %v3138_v56, %v1110_v45  ;;  %v1116_v13 = vstv %s3120_s6  ;;  %v1087_v15 = vadd.f32 %v1079_v1, %v1065_v3  ;;  %v1088_v16 = vadd.f32 %v1080_v5, %v1066_v60  ;;  %s3237_s6 = sld [smem:[#allocation8 + $0x285]] }
 0x104   : > { %v3156_v14 = vpop.eup %2292  ;;  %v1117_v17 = vadd.f32 %v1116_v13, %v1111_v0  ;;  %v1118_v18 = vadd.f32 %v1116_v13, %v1112_v7  ;;  %v1089_v20 = vsub.f32 0.0, %v1085_v10  ;;  %v1090_v21 = vsub.f32 0.0, %v1086_v11 }
 0x105   : > { %v3158_v19 = vpop.eup %2294  ;;  %v1119_v22 = vadd.f32 %v1116_v13, %v1113_v8  ;;  %v1120_v23 = vadd.f32 %v1116_v13, %v1114_v12  ;;  %v1091_v24 = vsub.f32 0.0, %v1087_v15  ;;  %v1092_v25 = vsub.f32 0.0, %v1088_v16 }
 0x106   : > { %v1122_v26 = vstv %s3127_s15  ;;  %v1144_v27 = vstv %s3129_s10  ;;  %v1093_v28 = vmul.f32 1.442695, %v1089_v20  ;;  %v1095_v29 = vmul.f32 1.442695, %v1090_v21  ;;  %s3250_s15 = sld [smem:[#allocation8 + $0x286]]  ;;  %s3258_s10 = sld [smem:[#allocation8 + $0x287]] }
 0x107   : > { %v1123_v30 = vmul.f32 %v3142_v63, %v1122_v26  ;;  %v1124_v31 = vmul.f32 %v3148_v6, %v1122_v26  ;;  %v1097_v32 = vmul.f32 1.442695, %v1091_v24  ;;  %v1099_v33 = vmul.f32 1.442695, %v1092_v25 }
 0x108   : > { %v1125_v34 = vmul.f32 %v3134_v53, %v1122_v26  ;;  %v1126_v35 = vmul.f32 %v3138_v56, %v1122_v26  ;;  %2296 = vpow2.f32 %v1093_v28  ;;  %v1145_v38 = vmul.f32 %v3142_v63, %v1144_v27 }
 0x109   : > { %v1131_v36 = vrot.slane %v1123_v30, 1  ;;  %v1132_v37 = vrot.slane %v1124_v31, 1  ;;  %2298 = vpow2.f32 %v1095_v29  ;;  %v1146_v42 = vmul.f32 %v3148_v6, %v1144_v27 }
 0x10a   : > { %v1133_v39 = vrot.slane %v1125_v34, 1  ;;  %v1134_v41 = vrot.slane %v1126_v35, 1  ;;  %2300 = vpow2.f32 %v1097_v32  ;;  %v1147_v47 = vmul.f32 %v3134_v53, %v1144_v27 }
 0x10b   : > { %v1139_v43 = vadd.f32 %v1131_v36, %v1117_v17  ;;  %v1140_v45 = vadd.f32 %v1132_v37, %v1118_v18  ;;  %2302 = vpow2.f32 %v1099_v33  ;;  %v1148_v50 = vmul.f32 %v3138_v56, %v1144_v27 }
 0x10c   : > { %v1141_v48 = vadd.f32 %v1133_v39, %v1119_v22  ;;  %v1142_v2 = vadd.f32 %v1134_v41, %v1120_v23  ;;  %v1153_v51 = vrot.slane %v1145_v38, 2  ;;  %v1154_v3 = vrot.slane %v1146_v42, 2 }
 0x10d   : > { %v1155_v55 = vrot.slane %v1147_v47, 2  ;;  %v1166_v57 = vstv %s3160_s8  ;;  %v1156_v60 = vrot.slane %v1148_v50, 2  ;;  %v1188_v16 = vstv %s3168_s11  ;;  %s3262_s8 = sld [smem:[#allocation10]] }
 0x10e   : > { %v1167_v61 = vmul.f32 %v3142_v63, %v1166_v57  ;;  %v1168_v62 = vmul.f32 %v3148_v6, %v1166_v57  ;;  %v1169_v0 = vmul.f32 %v3134_v53, %v1166_v57  ;;  %v1161_v1 = vadd.f32 %v1153_v51, %v1139_v43  ;;  %s3264_s11 = sld [smem:[#allocation12]] }
 0x10f   : > { %v1162_v5 = vadd.f32 %v1154_v3, %v1140_v45  ;;  %v1163_v7 = vadd.f32 %v1155_v55, %v1141_v48  ;;  %v1170_v8 = vmul.f32 %v3138_v56, %v1166_v57  ;;  %v1164_v10 = vadd.f32 %v1156_v60, %v1142_v2 }
 0x110   : > { %v1175_v11 = vrot.slane %v1167_v61, 3  ;;  %v1176_v12 = vrot.slane %v1168_v62, 3  ;;  %v1177_v13 = vrot.slane %v1169_v0, 3  ;;  %v1210_v17 = vstv %s3171_s21  ;;  %s3274_s21 = sld [smem:[#allocation10 + $0x1]] }
 0x111   : > { %v1178_v15 = vrot.slane %v1170_v8, 3  ;;  %v1232_v18 = vstv %s3173_s24  ;;  %v1189_v23 = vmul.f32 %v3142_v63, %v1188_v16  ;;  %v1190_v26 = vmul.f32 %v3148_v6, %v1188_v16  ;;  %s3276_s24 = sld [smem:[#allocation10 + $0x2]] }
 0x112   : > { %v1183_v20 = vadd.f32 %v1175_v11, %v1161_v1  ;;  %v1184_v21 = vadd.f32 %v1176_v12, %v1162_v5  ;;  %v1185_v22 = vadd.f32 %v1177_v13, %v1163_v7  ;;  %v2297_v24 = vpop.eup %2296  ;;  %v1191_v27 = vmul.f32 %v3134_v53, %v1188_v16 }
 0x113   : > { %v1186_v25 = vadd.f32 %v1178_v15, %v1164_v10  ;;  %v1192_v28 = vmul.f32 %v3138_v56, %v1188_v16  ;;  %v2299_v29 = vpop.eup %2298  ;;  %v1101_v30 = vadd.f32 1.0, %v2297_v24  ;;  %v1197_v31 = vrot.slane %v1189_v23, 4 }
 0x114   : > { %v1211_v32 = vmul.f32 %v3142_v63, %v1210_v17  ;;  %v1212_v33 = vmul.f32 %v3148_v6, %v1210_v17  ;;  %v2301_v34 = vpop.eup %2300  ;;  %v1102_v35 = vadd.f32 1.0, %v2299_v29  ;;  %v1198_v36 = vrot.slane %v1190_v26, 4 }
 0x115   : > { %v1199_v37 = vrot.slane %v1191_v27, 4  ;;  %v1200_v38 = vrot.slane %v1192_v28, 4  ;;  %v2303_v39 = vpop.eup %2302  ;;  %v1103_v41 = vadd.f32 1.0, %v2301_v34  ;;  %2304 = vrcp.f32 %v1101_v30 }
 0x116   : > { %v1205_v42 = vadd.f32 %v1197_v31, %v1183_v20  ;;  %v1213_v43 = vmul.f32 %v3134_v53, %v1210_v17  ;;  %v1104_v45 = vadd.f32 1.0, %v2303_v39  ;;  %2306 = vrcp.f32 %v1102_v35 }
 0x117   : > { %v1206_v47 = vadd.f32 %v1198_v36, %v1184_v21  ;;  %v1207_v48 = vadd.f32 %v1199_v37, %v1185_v22  ;;  %2308 = vrcp.f32 %v1103_v41  ;;  %v1208_v2 = vadd.f32 %v1200_v38, %v1186_v25 }
 0x118   : > { %v1214_v50 = vmul.f32 %v3138_v56, %v1210_v17  ;;  %v1219_v51 = vrot.slane %v1211_v32, 5  ;;  %2310 = vrcp.f32 %v1104_v45  ;;  %v1220_v3 = vrot.slane %v1212_v33, 5 }
 0x119   : > { %v1221_v55 = vrot.slane %v1213_v43, 5  ;;  %v1233_v57 = vmul.f32 %v3142_v63, %v1232_v18  ;;  %v1234_v62 = vmul.f32 %v3148_v6, %v1232_v18  ;;  %v1235_v0 = vmul.f32 %v3134_v53, %v1232_v18 }
 0x11a   : > { %v1222_v60 = vrot.slane %v1214_v50, 5  ;;  %v1227_v61 = vadd.f32 %v1219_v51, %v1205_v42  ;;  %v1228_v1 = vadd.f32 %v1220_v3, %v1206_v47  ;;  %v1236_v7 = vmul.f32 %v3138_v56, %v1232_v18 }
 0x11b   : > { %v1229_v5 = vadd.f32 %v1221_v55, %v1207_v48  ;;  %v1241_v8 = vrot.slane %v1233_v57, 6  ;;  %v1242_v11 = vrot.slane %v1234_v62, 6  ;;  %v1243_v12 = vrot.slane %v1235_v0, 6 }
 0x11c   : > { %v1230_v10 = vadd.f32 %v1222_v60, %v1208_v2  ;;  %v1254_v13 = vstv %s3192_s13  ;;  %v1244_v15 = vrot.slane %v1236_v7, 6  ;;  %v1296_v27 = vstv %s3195_s25  ;;  %s3294_s13 = sld [smem:[#allocation10 + $0x3]]  ;;  %s3296_s25 = sld [smem:[#allocation10 + $0x4]] }
 0x11d   : > { %v1249_v16 = vadd.f32 %v1241_v8, %v1227_v61  ;;  %v1255_v17 = vmul.f32 %v3142_v63, %v1254_v13  ;;  %v1256_v20 = vmul.f32 %v3148_v6, %v1254_v13  ;;  %v1250_v21 = vadd.f32 %v1242_v11, %v1228_v1 }
 0x11e   : > { %v1251_v22 = vadd.f32 %v1243_v12, %v1229_v5  ;;  %v1257_v23 = vmul.f32 %v3134_v53, %v1254_v13  ;;  %v1258_v24 = vmul.f32 %v3138_v56, %v1254_v13  ;;  %v1252_v25 = vadd.f32 %v1244_v15, %v1230_v10 }
 0x11f   : > { %v1263_v18 = vrot.slane %v1255_v17, 7  ;;  %v1264_v26 = vrot.slane %v1256_v20, 7  ;;  %v3214_v28 = vpop.eup %2304  ;;  %v1297_v31 = vmul.f32 %v3142_v63, %v1296_v27  ;;  %v1298_v32 = vmul.f32 %v3148_v6, %v1296_v27 }
 0x120   : > { %v1265_v29 = vrot.slane %v1257_v23, 7  ;;  %v1266_v30 = vrot.slane %v1258_v24, 7  ;;  %v3218_v33 = vpop.eup %2306  ;;  %v1299_v36 = vmul.f32 %v3134_v53, %v1296_v27  ;;  %v1300_v37 = vmul.f32 %v3138_v56, %v1296_v27 }
 0x121   : > { %v1271_v34 = vadd.f32 %v1263_v18, %v1249_v16  ;;  %v1272_v35 = vadd.f32 %v1264_v26, %v1250_v21  ;;  %v3222_v38 = vpop.eup %2308  ;;  %v1302_v42 = vstv %s3201_s18  ;;  %v1308_v43 = vstv %s3203_s12  ;;  %s3302_s18 = sld [smem:[#allocation10 + $0x80]]  ;;  %s2120_s12 = sld [smem:[#allocation12 + $0x1]] }
 0x122   : > { %v1273_v39 = vadd.f32 %v1265_v29, %v1251_v22  ;;  %v1274_v41 = vadd.f32 %v1266_v30, %v1252_v25  ;;  %v3226_v45 = vpop.eup %2310  ;;  %v1303_v2 = vadd.f32 %v1302_v42, %v1297_v31  ;;  %v1304_v50 = vadd.f32 %v1302_v42, %v1298_v32 }
 0x123   : > { %v1275_v47 = vsub.f32 0.0, %v1271_v34  ;;  %v1276_v48 = vsub.f32 0.0, %v1272_v35  ;;  %v1305_v55 = vadd.f32 %v1302_v42, %v1299_v36  ;;  %v1306_v57 = vadd.f32 %v1302_v42, %v1300_v37 }
 0x124   : > { %v1277_v51 = vsub.f32 0.0, %v1273_v39  ;;  %v1278_v3 = vsub.f32 0.0, %v1274_v41  ;;  %v1309_v62 = vmul.f32 %v3142_v63, %v1308_v43  ;;  %v1310_v0 = vmul.f32 %v3148_v6, %v1308_v43 }
 0x125   : > { %v1279_v60 = vmul.f32 1.442695, %v1275_v47  ;;  %v1281_v61 = vmul.f32 1.442695, %v1276_v48  ;;  %v1311_v7 = vmul.f32 %v3134_v53, %v1308_v43  ;;  %v1312_v8 = vmul.f32 %v3138_v56, %v1308_v43 }
 0x126   : > { %v1283_v1 = vmul.f32 1.442695, %v1277_v51  ;;  %v1285_v5 = vmul.f32 1.442695, %v1278_v3  ;;  %v1317_v10 = vrot.slane %v1309_v62, 1  ;;  %v1318_v11 = vrot.slane %v1310_v0, 1 }
 0x127   : > { %2312 = vpow2.f32 %v1279_v60  ;;  %v1330_v12 = vstv %s3212_s19  ;;  %v1319_v13 = vrot.slane %v1311_v7, 1  ;;  %v1320_v15 = vrot.slane %v1312_v8, 1  ;;  %s2121_s19 = sld [smem:[#allocation10 + $0x81]] }
 0x128   : > { %2314 = vpow2.f32 %v1281_v61  ;;  %v1331_v16 = vmul.f32 %v3142_v63, %v1330_v12  ;;  %v1325_v17 = vadd.f32 %v1317_v10, %v1303_v2  ;;  %v1326_v20 = vadd.f32 %v1318_v11, %v1304_v50 }
 0x129   : > { %2316 = vpow2.f32 %v1283_v1  ;;  %v1332_v21 = vmul.f32 %v3148_v6, %v1330_v12  ;;  %v1327_v22 = vadd.f32 %v1319_v13, %v1305_v55  ;;  %v1328_v23 = vadd.f32 %v1320_v15, %v1306_v57 }
 0x12a   : > { %2318 = vpow2.f32 %v1285_v5  ;;  %v1333_v24 = vmul.f32 %v3134_v53, %v1330_v12  ;;  %v1334_v25 = vmul.f32 %v3138_v56, %v1330_v12  ;;  %v1339_v18 = vrot.slane %v1331_v16, 2 }
 0x12b   : > { %v1340_v26 = vrot.slane %v1332_v21, 2  ;;  %v1352_v27 = vstv %s3228_s23  ;;  %v1374_v2 = vstv %s3235_s17  ;;  %v1396_v50 = vstv %s3237_s6  ;;  %s3322_s23 = sld [smem:[#allocation10 + $0x82]]  ;;  %s3333_s17 = sld [smem:[#allocation10 + $0x83]] }
 0x12c   : > { %v1341_v29 = vrot.slane %v1333_v24, 2  ;;  %v1353_v30 = vmul.f32 %v3142_v63, %v1352_v27  ;;  %v1354_v31 = vmul.f32 %v3148_v6, %v1352_v27  ;;  %v1355_v32 = vmul.f32 %v3134_v53, %v1352_v27  ;;  %s3335_s6 = sld [smem:[#allocation10 + $0x84]] }
 0x12d   : > { %v1342_v34 = vrot.slane %v1334_v25, 2  ;;  %v1347_v35 = vadd.f32 %v1339_v18, %v1325_v17  ;;  %v1348_v36 = vadd.f32 %v1340_v26, %v1326_v20  ;;  %v1356_v37 = vmul.f32 %v3138_v56, %v1352_v27 }
 0x12e   : > { %v1349_v39 = vadd.f32 %v1341_v29, %v1327_v22  ;;  %v1361_v41 = vrot.slane %v1353_v30, 3  ;;  %v1362_v42 = vrot.slane %v1354_v31, 3  ;;  %v1363_v43 = vrot.slane %v1355_v32, 3 }
 0x12f   : > { %v1350_v47 = vadd.f32 %v1342_v34, %v1328_v23  ;;  %v1364_v48 = vrot.slane %v1356_v37, 3  ;;  %v1375_v57 = vmul.f32 %v3142_v63, %v1374_v2  ;;  %v1376_v62 = vmul.f32 %v3148_v6, %v1374_v2 }
 0x130   : > { %v1369_v51 = vadd.f32 %v1361_v41, %v1347_v35  ;;  %v1370_v3 = vadd.f32 %v1362_v42, %v1348_v36  ;;  %v1371_v55 = vadd.f32 %v1363_v43, %v1349_v39  ;;  %v1377_v0 = vmul.f32 %v3134_v53, %v1374_v2 }
 0x131   : > { %v2313_v60 = vpop.eup %2312  ;;  %v1372_v61 = vadd.f32 %v1364_v48, %v1350_v47  ;;  %v1378_v1 = vmul.f32 %v3138_v56, %v1374_v2  ;;  %v1383_v8 = vrot.slane %v1375_v57, 4  ;;  %v1397_v10 = vmul.f32 %v3142_v63, %v1396_v50 }
 0x132   : > { %v2315_v5 = vpop.eup %2314  ;;  %v1287_v7 = vadd.f32 1.0, %v2313_v60  ;;  %v1398_v11 = vmul.f32 %v3148_v6, %v1396_v50  ;;  %v1384_v15 = vrot.slane %v1376_v62, 4  ;;  %v1385_v16 = vrot.slane %v1377_v0, 4 }
 0x133   : > { %v2317_v12 = vpop.eup %2316  ;;  %v1288_v13 = vadd.f32 1.0, %v2315_v5  ;;  %v1386_v17 = vrot.slane %v1378_v1, 4  ;;  %v1391_v22 = vadd.f32 %v1383_v8, %v1369_v51  ;;  %v1399_v23 = vmul.f32 %v3134_v53, %v1396_v50 }
 0x134   : > { %v2319_v20 = vpop.eup %2318  ;;  %v1289_v21 = vadd.f32 1.0, %v2317_v12  ;;  %2320 = vrcp.f32 %v1287_v7  ;;  %v1392_v25 = vadd.f32 %v1384_v15, %v1370_v3  ;;  %v1393_v18 = vadd.f32 %v1385_v16, %v1371_v55 }
 0x135   : > { %v1290_v24 = vadd.f32 1.0, %v2319_v20  ;;  %2322 = vrcp.f32 %v1288_v13  ;;  %v1394_v26 = vadd.f32 %v1386_v17, %v1372_v61  ;;  %v1400_v27 = vmul.f32 %v3138_v56, %v1396_v50 }
 0x136   : > { %2324 = vrcp.f32 %v1289_v21  ;;  %v1405_v29 = vrot.slane %v1397_v10, 5  ;;  %v1406_v30 = vrot.slane %v1398_v11, 5  ;;  %v1407_v31 = vrot.slane %v1399_v23, 5 }
 0x137   : > { %2326 = vrcp.f32 %v1290_v24  ;;  %v1418_v32 = vstv %s3250_s15  ;;  %v1408_v34 = vrot.slane %v1400_v27, 5  ;;  %v1440_v50 = vstv %s3258_s10  ;;  %s3343_s15 = sld [smem:[#allocation10 + $0x5]] }
 0x138   : > { %v1413_v35 = vadd.f32 %v1405_v29, %v1391_v22  ;;  %v1419_v36 = vmul.f32 %v3142_v63, %v1418_v32  ;;  %v1420_v37 = vmul.f32 %v3148_v6, %v1418_v32  ;;  %v1414_v39 = vadd.f32 %v1406_v30, %v1392_v25  ;;  %s3347_s10 = sld [smem:[#allocation10 + $0x85]] }
 0x139   : > { %v1415_v41 = vadd.f32 %v1407_v31, %v1393_v18  ;;  %v1421_v42 = vmul.f32 %v3134_v53, %v1418_v32  ;;  %v1422_v43 = vmul.f32 %v3138_v56, %v1418_v32  ;;  %v1416_v47 = vadd.f32 %v1408_v34, %v1394_v26 }
 0x13a   : > { %v1427_v48 = vrot.slane %v1419_v36, 6  ;;  %v1428_v2 = vrot.slane %v1420_v37, 6  ;;  %v1441_v55 = vmul.f32 %v3142_v63, %v1440_v50  ;;  %v1442_v57 = vmul.f32 %v3148_v6, %v1440_v50 }
 0x13b   : > { %v1429_v51 = vrot.slane %v1421_v42, 6  ;;  %v1430_v3 = vrot.slane %v1422_v43, 6  ;;  %v1443_v62 = vmul.f32 %v3134_v53, %v1440_v50  ;;  %v1444_v0 = vmul.f32 %v3138_v56, %v1440_v50 }
 0x13c   : > { %v1435_v60 = vadd.f32 %v1427_v48, %v1413_v35  ;;  %v1436_v61 = vadd.f32 %v1428_v2, %v1414_v39  ;;  %v1449_v7 = vrot.slane %v1441_v55, 7  ;;  %v1450_v8 = vrot.slane %v1442_v57, 7 }
 0x13d   : > { %v1437_v1 = vadd.f32 %v1429_v51, %v1415_v41  ;;  %v1438_v5 = vadd.f32 %v1430_v3, %v1416_v47  ;;  %v1451_v63 = vrot.slane %v1443_v62, 7  ;;  %v1452_v11 = vrot.slane %v1444_v0, 7 }
 0x13e   : > { %v3280_v10 = vpop.eup %2320  ;;  %v1482_v12 = vstv %s3262_s8  ;;  %v1488_v6 = vstv %s3264_s11  ;;  %v1457_v15 = vadd.f32 %v1449_v7, %v1435_v60  ;;  %v1458_v16 = vadd.f32 %v1450_v8, %v1436_v61  ;;  %s3353_s8 = sld [smem:[#allocation10 + $0x100]]  ;;  %s3358_s11 = sld [smem:[#allocation12 + $0x2]] }
 0x13f   : > { %v3284_v13 = vpop.eup %2322  ;;  %v1483_v17 = vmul.f32 %v3007_v44, %v1482_v12  ;;  %v1484_v53 = vmul.f32 %v3010_v49, %v1482_v12  ;;  %v1459_v56 = vadd.f32 %v1451_v63, %v1437_v1  ;;  %v1460_v21 = vadd.f32 %v1452_v11, %v1438_v5 }
 0x140   : > { %v3288_v20 = vpop.eup %2324  ;;  %v1485_v22 = vmul.f32 %v3012_v54, %v1482_v12  ;;  %v1486_v23 = vmul.f32 %v3014_v59, %v1482_v12  ;;  %v1461_v25 = vsub.f32 0.0, %v1457_v15  ;;  %v1462_v18 = vsub.f32 0.0, %v1458_v16 }
 0x141   : > { %v3292_v24 = vpop.eup %2326  ;;  %v1489_v26 = vadd.f32 %v1488_v6, %v1483_v17  ;;  %v1490_v27 = vadd.f32 %v1488_v6, %v1484_v53  ;;  %v1463_v29 = vsub.f32 0.0, %v1459_v56  ;;  %v1464_v30 = vsub.f32 0.0, %v1460_v21 }
 0x142   : > { %v1491_v31 = vadd.f32 %v1488_v6, %v1485_v22  ;;  %v1492_v32 = vadd.f32 %v1488_v6, %v1486_v23  ;;  %v1465_v34 = vmul.f32 1.442695, %v1461_v25  ;;  %v1467_v35 = vmul.f32 1.442695, %v1462_v18 }
 0x143   : > { %v1494_v36 = vstv %s3274_s21  ;;  %v1504_v37 = vstv %s3276_s24  ;;  %v1469_v39 = vmul.f32 1.442695, %v1463_v29  ;;  %v1471_v41 = vmul.f32 1.442695, %v1464_v30  ;;  %s3377_s21 = sld [smem:[#allocation10 + $0x101]]  ;;  %s3396_s24 = sld [smem:[#allocation10 + $0x102]] }
 0x144   : > { %v1495_v42 = vmul.f32 %v3068_v40, %v1494_v36  ;;  %v1496_v43 = vmul.f32 %v3073_v46, %v1494_v36  ;;  %2328 = vpow2.f32 %v1465_v34  ;;  %v1497_v47 = vmul.f32 %v3076_v52, %v1494_v36 }
 0x145   : > { %v1498_v48 = vmul.f32 %v3081_v58, %v1494_v36  ;;  %v1505_v2 = vmul.f32 %v3145_v4, %v1504_v37  ;;  %2330 = vpow2.f32 %v1467_v35  ;;  %v1506_v3 = vmul.f32 %v3152_v9, %v1504_v37 }
 0x146   : > { %v1499_v50 = vadd.f32 %v1495_v42, %v1489_v26  ;;  %v1500_v51 = vadd.f32 %v1496_v43, %v1490_v27  ;;  %2332 = vpow2.f32 %v1469_v39  ;;  %v1501_v55 = vadd.f32 %v1497_v47, %v1491_v31 }
 0x147   : > { %v1507_v57 = vmul.f32 %v3156_v14, %v1504_v37  ;;  %2334 = vpow2.f32 %v1471_v41  ;;  %v1502_v60 = vadd.f32 %v1498_v48, %v1492_v32  ;;  %v1508_v61 = vmul.f32 %v3158_v19, %v1504_v37 }
 0x148   : > { %v1509_v62 = vadd.f32 %v1505_v2, %v1499_v50  ;;  %v1510_v0 = vadd.f32 %v1506_v3, %v1500_v51  ;;  %v1514_v1 = vstv %s3294_s13  ;;  %v1524_v5 = vstv %s3296_s25  ;;  %s3408_s13 = sld [smem:[#allocation10 + $0x103]]  ;;  %s3410_s25 = sld [smem:[#allocation10 + $0x104]] }
 0x149   : > { %v1511_v7 = vadd.f32 %v1507_v57, %v1501_v55  ;;  %v1515_v8 = vmul.f32 %v3214_v28, %v1514_v1  ;;  %v1516_v63 = vmul.f32 %v3218_v33, %v1514_v1  ;;  %v1517_v11 = vmul.f32 %v3222_v38, %v1514_v1 }
 0x14a   : > { %v1512_v12 = vadd.f32 %v1508_v61, %v1502_v60  ;;  %v1518_v6 = vmul.f32 %v3226_v45, %v1514_v1  ;;  %v3317_v15 = vmul.f32 %v3280_v10, %v1524_v5  ;;  %v3320_v16 = vmul.f32 %v3284_v13, %v1524_v5 }
 0x14b   : > { %v3325_v17 = vmul.f32 %v3288_v20, %v1524_v5  ;;  %v1564_v53 = vstv %s3302_s18  ;;  %v1570_v56 = vstv %s2120_s12  ;;  %v1576_v21 = vstv %s2121_s19  ;;  %s3422_s18 = sld [smem:[#allocation10 + $0x105]]  ;;  %s3440_s12 = sld [smem:[#allocation10 + $0x180]] }
 0x14c   : > { %v1519_v22 = vadd.f32 %v1515_v8, %v1509_v62  ;;  %v3328_v23 = vadd.f32 %v1516_v63, %v1510_v0  ;;  %v3330_v25 = vadd.f32 %v1517_v11, %v1511_v7  ;;  %v1565_v18 = vmul.f32 %v3007_v44, %v1564_v53  ;;  %s3445_s19 = sld [smem:[#allocation12 + $0x3]] }
 0x14d   : > { %v1528_v27 = vmul.f32 %v3292_v24, %v1524_v5  ;;  %v1566_v29 = vmul.f32 %v3010_v49, %v1564_v53  ;;  %v1567_v30 = vmul.f32 %v3012_v54, %v1564_v53  ;;  %v1568_v31 = vmul.f32 %v3014_v59, %v1564_v53 }
 0x14e   : > { %v2329_v26 = vpop.eup %2328  ;;  %v1571_v35 = vadd.f32 %v1570_v56, %v1565_v18  ;;  %v1577_v36 = vmul.f32 %v3068_v40, %v1576_v21  ;;  %v1578_v37 = vmul.f32 %v3073_v46, %v1576_v21  ;;  %v1579_v50 = vmul.f32 %v3076_v52, %v1576_v21 }
 0x14f   : > { %v2331_v32 = vpop.eup %2330  ;;  %v1473_v34 = vadd.f32 1.0, %v2329_v26  ;;  %v1572_v42 = vadd.f32 %v1570_v56, %v1566_v29  ;;  %v1573_v43 = vadd.f32 %v1570_v56, %v1567_v30  ;;  %v1574_v47 = vadd.f32 %v1570_v56, %v1568_v31 }
 0x150   : > { %v2333_v39 = vpop.eup %2332  ;;  %v1474_v41 = vadd.f32 1.0, %v2331_v32  ;;  %v1580_v51 = vmul.f32 %v3081_v58, %v1576_v21  ;;  %v1581_v55 = vadd.f32 %v1577_v36, %v1571_v35  ;;  %v1586_v62 = vstv %s3322_s23  ;;  %s3447_s23 = sld [smem:[#allocation10 + $0x181]] }
 0x151   : > { %v2335_v48 = vpop.eup %2334  ;;  %v1475_v2 = vadd.f32 1.0, %v2333_v39  ;;  %2336 = vrcp.f32 %v1473_v34  ;;  %v1582_v57 = vadd.f32 %v1578_v37, %v1572_v42  ;;  %v1583_v60 = vadd.f32 %v1579_v50, %v1573_v43 }
 0x152   : > { %v1476_v3 = vadd.f32 1.0, %v2335_v48  ;;  %2338 = vrcp.f32 %v1474_v41  ;;  %v1584_v61 = vadd.f32 %v1580_v51, %v1574_v47  ;;  %v1587_v0 = vmul.f32 %v3145_v4, %v1586_v62 }
 0x153   : > { %2340 = vrcp.f32 %v1475_v2  ;;  %v1588_v1 = vmul.f32 %v3152_v9, %v1586_v62  ;;  %v1589_v5 = vmul.f32 %v3156_v14, %v1586_v62  ;;  %v1522_v7 = vadd.f32 %v1518_v6, %v1512_v12 }
 0x154   : > { %2342 = vrcp.f32 %v1476_v3  ;;  %v1590_v8 = vmul.f32 %v3158_v19, %v1586_v62  ;;  %v1596_v63 = vstv %s3333_s17  ;;  %v1606_v11 = vstv %s3335_s6  ;;  %s3450_s17 = sld [smem:[#allocation10 + $0x182]]  ;;  %s3452_s6 = sld [smem:[#allocation10 + $0x183]] }
 0x155   : > { %v1591_v53 = vadd.f32 %v1587_v0, %v1581_v55  ;;  %v1592_v56 = vadd.f32 %v1588_v1, %v1582_v57  ;;  %v1593_v21 = vadd.f32 %v1589_v5, %v1583_v60  ;;  %v1597_v18 = vmul.f32 %v3214_v28, %v1596_v63 }
 0x156   : > { %v1594_v26 = vadd.f32 %v1590_v8, %v1584_v61  ;;  %v1598_v29 = vmul.f32 %v3218_v33, %v1596_v63  ;;  %v1599_v30 = vmul.f32 %v3222_v38, %v1596_v63  ;;  %v1600_v31 = vmul.f32 %v3226_v45, %v1596_v63 }
 0x157   : > { %v1534_v12 = vstv %s3343_s15  ;;  %v1601_v6 = vadd.f32 %v1597_v18, %v1591_v53  ;;  %v1607_v32 = vmul.f32 %v3280_v10, %v1606_v11  ;;  %v1608_v34 = vmul.f32 %v3284_v13, %v1606_v11  ;;  %s3467_s15 = sld [smem:[#allocation10 + $0x184]] }
 0x158   : > { %v1602_v35 = vadd.f32 %v1598_v29, %v1592_v56  ;;  %v1603_v36 = vadd.f32 %v1599_v30, %v1593_v21  ;;  %v1609_v37 = vmul.f32 %v3288_v20, %v1606_v11  ;;  %v1616_v39 = vstv %s3347_s10  ;;  %s3469_s10 = sld [smem:[#allocation10 + $0x185]] }
 0x159   : > { %v1529_v41 = vadd.f32 %v3317_v15, %v1519_v22  ;;  %v1604_v42 = vadd.f32 %v1600_v31, %v1594_v26  ;;  %v1610_v43 = vmul.f32 %v3292_v24, %v1606_v11  ;;  %v1530_v48 = vadd.f32 %v3320_v16, %v3328_v23 }
 0x15a   : > { %v1531_v2 = vadd.f32 %v3325_v17, %v3330_v25  ;;  %v1532_v50 = vadd.f32 %v1528_v27, %v1522_v7  ;;  %v1611_v51 = vadd.f32 %v1607_v32, %v1601_v6  ;;  %v1612_v22 = vadd.f32 %v1608_v34, %v1602_v35 }
 0x15b   : > { %v3371_v47 = vpop.eup %2336  ;;  %v1646_v57 = vstv %s3353_s8  ;;  %v1613_v16 = vadd.f32 %v1609_v37, %v1603_v36  ;;  %v1652_v17 = vstv %s3358_s11  ;;  %v1614_v0 = vadd.f32 %v1610_v43, %v1604_v42  ;;  %s1809_s8 = sld [smem:[#allocation13]] }
 0x15c   : > { %v3379_v3 = vpop.eup %2338  ;;  %v1535_v15 = vmul.f32 %v3371_v47, %v1534_v12  ;;  %v1617_v55 = vmul.f32 %v3371_v47, %v1616_v39  ;;  %v1647_v8 = vmul.f32 %v3007_v44, %v1646_v57  ;;  %v1648_v63 = vmul.f32 %v3010_v49, %v1646_v57  ;;  %s1815_s11 = sld [smem:[#allocation2]] }
 0x15d   : > { %v3384_v60 = vpop.eup %2340  ;;  %v1536_v61 = vmul.f32 %v3379_v3, %v1534_v12  ;;  %v1618_v23 = vmul.f32 %v3379_v3, %v1616_v39  ;;  %v1649_v30 = vmul.f32 %v3012_v54, %v1646_v57  ;;  %v1658_v34 = vstv %s3377_s21  ;;  %s2140_s21 = sld [smem:[#allocation13 + $0x1]] }
 0x15e   : > { %v3389_v25 = vpop.eup %2342  ;;  %v1537_v27 = vmul.f32 %v3384_v60, %v1534_v12  ;;  %v1539_v62 = vadd.f32 %v1535_v15, %v1529_v41  ;;  %v1619_v1 = vmul.f32 %v3384_v60, %v1616_v39  ;;  %v3399_v56 = vadd.f32 %v1617_v55, %v1611_v51 }
 0x15f   : > { %v1538_v5 = vmul.f32 %v3389_v25, %v1534_v12  ;;  %v1540_v7 = vadd.f32 %v1536_v61, %v1530_v48  ;;  %v1620_v53 = vmul.f32 %v3389_v25, %v1616_v39  ;;  %v3401_v21 = vadd.f32 %v1618_v23, %v1612_v22 }
 0x160   : > { %v1541_v11 = vadd.f32 %v1537_v27, %v1531_v2  ;;  %v1543_v26 = vsub.f32 0.0, %v1539_v62  ;;  %v3403_v29 = vadd.f32 %v1619_v1, %v1613_v16  ;;  %v1650_v12 = vmul.f32 %v3014_v59, %v1646_v57 }
 0x161   : > { %v1542_v18 = vadd.f32 %v1538_v5, %v1532_v50  ;;  %v1544_v31 = vsub.f32 0.0, %v1540_v7  ;;  %v1653_v32 = vadd.f32 %v1652_v17, %v1647_v8  ;;  %v3412_v35 = vadd.f32 %v1620_v53, %v1614_v0 }
 0x162   : > { %v1545_v6 = vsub.f32 0.0, %v1541_v11  ;;  %v1625_v36 = vsub.f32 0.0, %v3399_v56  ;;  %v1626_v37 = vsub.f32 0.0, %v3401_v21  ;;  %v1654_v39 = vadd.f32 %v1652_v17, %v1648_v63 }
 0x163   : > { %v1546_v41 = vsub.f32 0.0, %v1542_v18  ;;  %v1547_v42 = vmul.f32 1.442695, %v1543_v26  ;;  %v1627_v43 = vsub.f32 0.0, %v3403_v29  ;;  %v1655_v48 = vadd.f32 %v1652_v17, %v1649_v30 }
 0x164   : > { %v1549_v2 = vmul.f32 1.442695, %v1544_v31  ;;  %v1656_v50 = vadd.f32 %v1652_v17, %v1650_v12  ;;  %v1659_v51 = vmul.f32 %v3068_v40, %v1658_v34  ;;  %v1660_v15 = vmul.f32 %v3073_v46, %v1658_v34 }
 0x165   : > { %v1551_v22 = vmul.f32 1.442695, %v1545_v6  ;;  %v1661_v55 = vmul.f32 %v3076_v52, %v1658_v34  ;;  %v1662_v57 = vmul.f32 %v3081_v58, %v1658_v34  ;;  %v1668_v61 = vstv %s3396_s24  ;;  %s2141_s24 = sld [smem:[#allocation13 + $0x2]] }
 0x166   : > { %v1628_v16 = vsub.f32 0.0, %v3412_v35  ;;  %v1663_v23 = vadd.f32 %v1659_v51, %v1653_v32  ;;  %v1664_v27 = vadd.f32 %v1660_v15, %v1654_v39  ;;  %v1669_v17 = vmul.f32 %v3145_v4, %v1668_v61 }
 0x167   : > { %2344 = vpow2.f32 %v1547_v42  ;;  %v1665_v62 = vadd.f32 %v1661_v55, %v1655_v48  ;;  %v1666_v0 = vadd.f32 %v1662_v57, %v1656_v50  ;;  %v1670_v1 = vmul.f32 %v3152_v9, %v1668_v61 }
 0x168   : > { %2346 = vpow2.f32 %v1549_v2  ;;  %v1671_v5 = vmul.f32 %v3156_v14, %v1668_v61  ;;  %v1672_v7 = vmul.f32 %v3158_v19, %v1668_v61  ;;  %v1673_v8 = vadd.f32 %v1669_v17, %v1663_v23 }
 0x169   : > { %2348 = vpow2.f32 %v1551_v22  ;;  %v1674_v63 = vadd.f32 %v1670_v1, %v1664_v27  ;;  %v1678_v11 = vstv %s3408_s13  ;;  %v1688_v53 = vstv %s3410_s25  ;;  %s2142_s13 = sld [smem:[#allocation13 + $0x3]]  ;;  %s2061_s25 = sshll.u32 %s2848_s16, 2 }
 0x16a   : > { %v1675_v56 = vadd.f32 %v1671_v5, %v1665_v62  ;;  %v1676_v21 = vadd.f32 %v1672_v7, %v1666_v0  ;;  %v1679_v18 = vmul.f32 %v3214_v28, %v1678_v11  ;;  %v1680_v26 = vmul.f32 %v3218_v33, %v1678_v11 }
 0x16b   : > { %v1681_v29 = vmul.f32 %v3222_v38, %v1678_v11  ;;  %v1682_v30 = vmul.f32 %v3226_v45, %v1678_v11  ;;  %v1689_v31 = vmul.f32 %v3280_v10, %v1688_v53  ;;  %v1690_v12 = vmul.f32 %v3284_v13, %v1688_v53 }
 0x16c   : > { %v1683_v6 = vadd.f32 %v1679_v18, %v1673_v8  ;;  %v1684_v32 = vadd.f32 %v1680_v26, %v1674_v63  ;;  %v1691_v34 = vmul.f32 %v3288_v20, %v1688_v53  ;;  %v1692_v35 = vmul.f32 %v3292_v24, %v1688_v53 }
 0x16d   : > { %v1553_v39 = vmul.f32 1.442695, %v1546_v41  ;;  %v1685_v42 = vadd.f32 %v1681_v29, %v1675_v56  ;;  %v1686_v48 = vadd.f32 %v1682_v30, %v1676_v21  ;;  %v1698_v2 = vstv %s3422_s18  ;;  %s2149_s18 = sshll.u32 %s2690_s9, 6  ;;  %s2622_s9 = smov [#allocation15]  }
 0x16e   : > { %v1629_v50 = vmul.f32 1.442695, %v1625_v36  ;;  %v1693_v51 = vadd.f32 %v1689_v31, %v1683_v6  ;;  %v1694_v15 = vadd.f32 %v1690_v12, %v1684_v32  ;;  %v1699_v22 = vmul.f32 %v3371_v47, %v1698_v2 }
 0x16f   : > { %v1631_v55 = vmul.f32 1.442695, %v1626_v37  ;;  %v1695_v57 = vadd.f32 %v1691_v34, %v1685_v42  ;;  %v1696_v61 = vadd.f32 %v1692_v35, %v1686_v48  ;;  %v1633_v23 = vmul.f32 1.442695, %v1627_v43 }
 0x170   : > { %v1700_v27 = vmul.f32 %v3379_v3, %v1698_v2  ;;  %v1701_v17 = vmul.f32 %v3384_v60, %v1698_v2  ;;  %2350 = vpow2.f32 %v1553_v39  ;;  %v1635_v62 = vmul.f32 1.442695, %v1628_v16 }
 0x171   : > { %v2345_v41 = vpop.eup %2344  ;;  %v1702_v36 = vmul.f32 %v3389_v25, %v1698_v2  ;;  %v1703_v0 = vadd.f32 %v1699_v22, %v1693_v51  ;;  %2352 = vpow2.f32 %v1629_v50  ;;  %v1728_v56 = vstv %s3440_s12  ;;  %s358_s12 = scalar_lea.vmem [#allocation15], %s2061_s25 }
 0x172   : > { %v2347_v1 = vpop.eup %2346  ;;  %v1704_v37 = vadd.f32 %v1700_v27, %v1694_v15  ;;  %v1705_v5 = vadd.f32 %v1701_v17, %v1695_v57  ;;  %2354 = vpow2.f32 %v1631_v55  ;;  %v3455_v21 = vadd.f32 1.0, %v2345_v41 }
 0x173   : > { %v2349_v43 = vpop.eup %2348  ;;  %v1706_v7 = vadd.f32 %v1702_v36, %v1696_v61  ;;  %v1707_v8 = vsub.f32 0.0, %v1703_v0  ;;  %2356 = vpow2.f32 %v1633_v23  ;;  %v3457_v18 = vadd.f32 1.0, %v2347_v1 }
 0x174   : > { %v1708_v63 = vsub.f32 0.0, %v1704_v37  ;;  %v1709_v16 = vsub.f32 0.0, %v1705_v5  ;;  %2358 = vpow2.f32 %v1635_v62  ;;  %v1729_v29 = vmul.f32 %v3007_v44, %v1728_v56 }
 0x175   : > { %v1710_v11 = vsub.f32 0.0, %v1706_v7  ;;  %v1711_v53 = vmul.f32 1.442695, %v1707_v8  ;;  %v3460_v30 = vadd.f32 1.0, %v2349_v43  ;;  %v1730_v12 = vmul.f32 %v3010_v49, %v1728_v56 }
 0x176   : > { %v1713_v26 = vmul.f32 1.442695, %v1708_v63  ;;  %v1715_v31 = vmul.f32 1.442695, %v1709_v16  ;;  %v1731_v6 = vmul.f32 %v3012_v54, %v1728_v56  ;;  %v1732_v32 = vmul.f32 %v3014_v59, %v1728_v56 }
 0x177   : > { %2360 = vpow2.f32 %v1711_v53  ;;  %v1734_v34 = vstv %s3445_s19  ;;  %v1740_v35 = vstv %s3447_s23  ;;  %v1717_v39 = vmul.f32 1.442695, %v1710_v11  ;;  %s1920_s19 = sshll.u32 %s358_s12, 4  ;;  %s3505_s19 = int_to_ptr.vmem [resolvable:$true] %s1920_s19 }
 0x178   : > { %v1735_v44 = vadd.f32 %v1734_v34, %v1729_v29  ;;  %v1736_v42 = vadd.f32 %v1734_v34, %v1730_v12  ;;  %v1737_v48 = vadd.f32 %v1734_v34, %v1731_v6  ;;  %2362 = vpow2.f32 %v1713_v26 }
 0x179   : > { %v1738_v2 = vadd.f32 %v1734_v34, %v1732_v32  ;;  %v1741_v49 = vmul.f32 %v3068_v40, %v1740_v35  ;;  %v1742_v54 = vmul.f32 %v3073_v46, %v1740_v35  ;;  %v1743_v59 = vmul.f32 %v3076_v52, %v1740_v35 }
 0x17a   : > { %v2351_v50 = vpop.eup %2350  ;;  %v1744_v51 = vmul.f32 %v3081_v58, %v1740_v35  ;;  %v1750_v15 = vstv %s3450_s17  ;;  %v1760_v22 = vstv %s3452_s6  ;;  %v1770_v63 = vstv %s3467_s15  ;;  %s3503_s6 = scalar_lea.hbm %s3554_s7, %s2149_s18  ;;  %s1906_s15 = scalar_lea.sflag [#allocation5], %s2848_s16 }
 0x17b   : > { %v2353_v55 = vpop.eup %2352  ;;  %v1745_v57 = vadd.f32 %v1741_v49, %v1735_v44  ;;  %v1746_v61 = vadd.f32 %v1742_v54, %v1736_v42  ;;  %v1751_v23 = vmul.f32 %v3145_v4, %v1750_v15  ;;  %v1752_v27 = vmul.f32 %v3152_v9, %v1750_v15 }
 0x17c   : > { %v2355_v17 = vpop.eup %2354  ;;  %v1747_v41 = vadd.f32 %v1743_v59, %v1737_v48  ;;  %v1748_v40 = vadd.f32 %v1744_v51, %v1738_v2  ;;  %v1753_v46 = vmul.f32 %v3156_v14, %v1750_v15  ;;  %v1754_v52 = vmul.f32 %v3158_v19, %v1750_v15 }
 0x17d   : > { %v2357_v62 = vpop.eup %2356  ;;  %v1755_v58 = vadd.f32 %v1751_v23, %v1745_v57  ;;  %v1756_v36 = vadd.f32 %v1752_v27, %v1746_v61  ;;  %v1761_v0 = vmul.f32 %v3214_v28, %v1760_v22  ;;  %v1762_v1 = vmul.f32 %v3218_v33, %v1760_v22 }
 0x17e   : > { %v2359_v37 = vpop.eup %2358  ;;  %v1757_v4 = vadd.f32 %v1753_v46, %v1747_v41  ;;  %v1758_v5 = vadd.f32 %v1754_v52, %v1748_v40  ;;  %v1763_v9 = vmul.f32 %v3222_v38, %v1760_v22  ;;  %v1764_v43 = vmul.f32 %v3226_v45, %v1760_v22 }
 0x17f   : > { %v1765_v7 = vadd.f32 %v1761_v0, %v1755_v58  ;;  %v1766_v8 = vadd.f32 %v1762_v1, %v1756_v36  ;;  %v1780_v14 = vstv %s3469_s10  ;;  %v1771_v11 = vmul.f32 %v3280_v10, %v1770_v63  ;;  %s2531_s10 = scalar_lea.vmem %s3505_s19, 64 }
 0x180   : > { %v1767_v16 = vadd.f32 %v1763_v9, %v1757_v4  ;;  %v1768_v19 = vadd.f32 %v1764_v43, %v1758_v5  ;;  %v1772_v53 = vmul.f32 %v3284_v13, %v1770_v63  ;;  %2364 = vpow2.f32 %v1715_v31  ;;  %p2532_p8 = scmp.ne.s32.totalorder %s3505_s19, %s2531_s10 }
 0x181   : > { %v2361_v28 = vpop.eup %2360  ;;  %v1773_v33 = vmul.f32 %v3288_v20, %v1770_v63  ;;  %v1774_v56 = vmul.f32 %v3292_v24, %v1770_v63  ;;  %v1781_v38 = vmul.f32 %v3371_v47, %v1780_v14  ;;  %2366 = vpow2.f32 %v1717_v39 }
 0x182   : > { %v1775_v45 = vadd.f32 %v1771_v11, %v1765_v7  ;;  %v1776_v26 = vadd.f32 %v1772_v53, %v1766_v8  ;;  %v1782_v29 = vmul.f32 %v3379_v3, %v1780_v14  ;;  %v2363_v12 = vpop.eup %2362  ;;  %v1558_v6 = vadd.f32 1.0, %v2351_v50  ;;  %p2533_p2 = pnand %p2532_p8, %p3574_p0 }
 0x183   : > { %v1777_v32 = vadd.f32 %v1773_v33, %v1767_v16  ;;  %v1778_v34 = vadd.f32 %v1774_v56, %v1768_v19  ;;  %2368 = vrcp.f32 %v3455_v21  ;;  %v1637_v10 = vadd.f32 1.0, %v2353_v55 }
 0x184   : > { %v1783_v13 = vmul.f32 %v3384_v60, %v1780_v14  ;;  %v1784_v20 = vmul.f32 %v3389_v25, %v1780_v14  ;;  %2370 = vrcp.f32 %v3457_v18  ;;  %v1638_v24 = vadd.f32 1.0, %v2355_v17  ;;  %p2534_p5 = pneg %p2533_p2 }
 0x185   : > { %v1785_v47 = vadd.f32 %v1781_v38, %v1775_v45  ;;  %v1786_v31 = vadd.f32 %v1782_v29, %v1776_v26  ;;  %2372 = vrcp.f32 %v3460_v30  ;;  %v1639_v35 = vadd.f32 1.0, %v2357_v62 }
 0x186   : > { %v1787_v3 = vadd.f32 %v1783_v13, %v1777_v32  ;;  %v1788_v39 = vadd.f32 %v1784_v20, %v1778_v34  ;;  %2374 = vrcp.f32 %v1558_v6  ;;  %v1640_v54 = vadd.f32 1.0, %v2359_v37 }
 0x187   : > { %v1789_v44 = vsub.f32 0.0, %v1785_v47  ;;  %v1790_v42 = vsub.f32 0.0, %v1786_v31  ;;  %2376 = vrcp.f32 %v1637_v10  ;;  %v1719_v50 = vadd.f32 1.0, %v2361_v28 }
 0x188   : > { %v1791_v21 = vsub.f32 0.0, %v1787_v3  ;;  %v1792_v48 = vsub.f32 0.0, %v1788_v39  ;;  %2378 = vrcp.f32 %v1638_v24  ;;  %v1720_v59 = vadd.f32 1.0, %v2363_v12 }
 0x189   : > { %v1793_v60 = vmul.f32 1.442695, %v1789_v44  ;;  %v1795_v2 = vmul.f32 1.442695, %v1790_v42  ;;  %2380 = vrcp.f32 %v1639_v35  ;;  %v1810_v27 = vstv %s1809_s8  ;;  %s2535_s8 = sshll.u32 %s2622_s9, 4  ;;  %s2536_s8 = int_to_ptr.vmem [resolvable:$false] %s2535_s8 }
 0x18a   : > { %v1797_v25 = vmul.f32 1.442695, %v1791_v21  ;;  %v1799_v18 = vmul.f32 1.442695, %v1792_v48  ;;  %v2365_v49 = vpop.eup %2364  ;;  %v1816_v36 = vstv %s1815_s11  ;;  %v1822_v0 = vstv %s2140_s21  ;;  %s2537_s11 = scalar_lea.vmem %s2536_s8, 128  ;;  %p2538_p9 = scmp.lt.s32.totalorder %s3505_s19, %s2536_s8 }
 0x18b   : > { %2382 = vpow2.f32 %v1793_v60  ;;  %v2367_v30 = vpop.eup %2366  ;;  %v1721_v15 = vadd.f32 1.0, %v2365_v49  ;;  %v1832_v53 = vstv %s2141_s24  ;;  %v1842_v47 = vstv %s2142_s13  ;;  %p2539_p1 = scmp.lt.s32.totalorder %s2537_s11, %s2531_s10 }
 0x18c   : > { %2384 = vpow2.f32 %v1795_v2  ;;  %v1722_v55 = vadd.f32 1.0, %v2367_v30 }
 0x18d   : > { %2386 = vpow2.f32 %v1797_v25  ;;  %v2369_v51 = vpop.eup %2368  ;;  %p2540_p7 = por %p2539_p1, %p2538_p9 }
 0x18e   : > { %2388 = vpow2.f32 %v1799_v18  ;;  %v2371_v22 = vpop.eup %2370  ;;  %v1811_v46 = vmul.f32 %v2369_v51, %v1810_v27 }
 0x18f   : > { %2390 = vrcp.f32 %v1640_v54  ;;  %v2373_v57 = vpop.eup %2372  ;;  %v1812_v58 = vmul.f32 %v2371_v22, %v1810_v27  ;;  %p2541_p3 = pnand %p2540_p7, %p2534_p5 }
 0x190   : > { %2392 = vrcp.f32 %v1719_v50  ;;  %v2375_v61 = vpop.eup %2374  ;;  %v1813_v4 = vmul.f32 %v2373_v57, %v1810_v27  ;;  %v1817_v63 = vadd.f32 %v1816_v36, %v1811_v46 }
 0x191   : > { %2394 = vrcp.f32 %v1720_v59  ;;  %v2377_v23 = vpop.eup %2376  ;;  %v1814_v43 = vmul.f32 %v2375_v61, %v1810_v27  ;;  %v1818_v19 = vadd.f32 %v1816_v36, %v1812_v58 }
 0x192   : > { %2396 = vrcp.f32 %v1721_v15  ;;  %v2379_v17 = vpop.eup %2378  ;;  %v1823_v14 = vmul.f32 %v2377_v23, %v1822_v0  ;;  %v1819_v33 = vadd.f32 %v1816_v36, %v1813_v4 }
 0x193   : > { %2398 = vrcp.f32 %v1722_v55  ;;  %v2381_v41 = vpop.eup %2380  ;;  %v1824_v11 = vmul.f32 %v2379_v17, %v1822_v0  ;;  %v1820_v45 = vadd.f32 %v1816_v36, %v1814_v43  ;;  %v2621_v36 = vmov 1966171168  }
 0x194   : > { %v1825_v56 = vmul.f32 %v2381_v41, %v1822_v0  ;;  %v1827_v12 = vadd.f32 %v1823_v14, %v1817_v63 }
 0x195   : > { %v2383_v40 = vpop.eup %2382  ;;  %v1828_v32 = vadd.f32 %v1824_v11, %v1818_v19 }
 0x196   : > { %v2385_v52 = vpop.eup %2384  ;;  %v1801_v62 = vadd.f32 1.0, %v2383_v40  ;;  %v1829_v10 = vadd.f32 %v1825_v56, %v1819_v33 }
 0x197   : > { %v2387_v1 = vpop.eup %2386  ;;  %v1802_v37 = vadd.f32 1.0, %v2385_v52 }
 0x198   : > { %v2389_v5 = vpop.eup %2388  ;;  %v1803_v9 = vadd.f32 1.0, %v2387_v1  ;;  %2400 = vrcp.f32 %v1801_v62  ;;  %v1880_v1 = vlaneseq }
 0x199   : > { %v2391_v7 = vpop.eup %2390  ;;  %v1804_v8 = vadd.f32 1.0, %v2389_v5  ;;  %2402 = vrcp.f32 %v1802_v37 }
 0x19a   : > { %v2393_v16 = vpop.eup %2392  ;;  %2404 = vrcp.f32 %v1803_v9  ;;  %v1826_v26 = vmul.f32 %v2391_v7, %v1822_v0  ;;  %v1878_v0 = vunpack.c.l.s4 %v2621_v36  ;;  %v1881_v4 = vshrl.u32 %v1880_v1, 7 }
 0x19b   : > { %v2395_v28 = vpop.eup %2394  ;;  %2406 = vrcp.f32 %v1804_v8  ;;  %v1833_v6 = vmul.f32 %v2393_v16, %v1832_v53  ;;  %vm1902_vm0 = vcmp.lt.s32.totalorder %v1880_v1, 512 }
 0x19c   : > { %v2397_v38 = vpop.eup %2396  ;;  %v1834_v34 = vmul.f32 %v2395_v28, %v1832_v53  ;;  %v1830_v20 = vadd.f32 %v1826_v26, %v1820_v45  ;;  %v1879_v37 = vunpack.c.0.s8 %v1878_v0 }
 0x19d   : > { %v2399_v29 = vpop.eup %2398  ;;  %v1835_v13 = vmul.f32 %v2397_v38, %v1832_v53  ;;  %v1837_v31 = vadd.f32 %v1833_v6, %v1827_v12 }
 0x19e   : > { %v1836_v24 = vmul.f32 %v2399_v29, %v1832_v53  ;;  %v1838_v3 = vadd.f32 %v1834_v34, %v1828_v32  ;;  %v1882_v9 = vsub.s32 %v1879_v37, %v1881_v4 }
 0x19f   : > { %v1839_v44 = vadd.f32 %v1835_v13, %v1829_v10 }
 0x1a0   : > { %v1840_v48 = vadd.f32 %v1836_v24, %v1830_v20 }
 0x1a2   : > { %v2401_v35 = vpop.eup %2400 }
 0x1a3   : > { %v2403_v39 = vpop.eup %2402  ;;  %v1843_v42 = vmul.f32 %v2401_v35, %v1842_v47 }
 0x1a4   : > { %v2405_v21 = vpop.eup %2404  ;;  %v1844_v60 = vmul.f32 %v2403_v39, %v1842_v47 }
 0x1a5   : > { %v2407_v2 = vpop.eup %2406  ;;  %v1845_v25 = vmul.f32 %v2405_v21, %v1842_v47  ;;  %v1847_v18 = vadd.f32 %v1843_v42, %v1837_v31 }
 0x1a6   : > { %v1846_v49 = vmul.f32 %v2407_v2, %v1842_v47  ;;  %v1848_v54 = vadd.f32 %v1844_v60, %v1838_v3 }
 0x1a7   : > { %v1849_v30 = vadd.f32 %v1845_v25, %v1839_v44  ;;  %v1851_v50 = vsub.f32 0.0, %v1847_v18 }
 0x1a8   : > { %v1850_v59 = vadd.f32 %v1846_v49, %v1840_v48  ;;  %v1852_v51 = vsub.f32 0.0, %v1848_v54 }
 0x1a9   : > { %v1853_v15 = vsub.f32 0.0, %v1849_v30  ;;  %v1855_v22 = vmul.f32 1.442695, %v1851_v50 }
 0x1aa   : > { %v1854_v55 = vsub.f32 0.0, %v1850_v59  ;;  %v1857_v57 = vmul.f32 1.442695, %v1852_v51 }
 0x1ab   : > { %2408 = vpow2.f32 %v1855_v22  ;;  %v1859_v61 = vmul.f32 1.442695, %v1853_v15 }
 0x1ac   : > { %2410 = vpow2.f32 %v1857_v57  ;;  %v1861_v23 = vmul.f32 1.442695, %v1854_v55 }
 0x1ad   : > { %2412 = vpow2.f32 %v1859_v61 }
 0x1ae   : > { %2414 = vpow2.f32 %v1861_v23 }
 0x1b5   : > { %v2409_v27 = vpop.eup %2408 }
 0x1b6   : > { %v2411_v17 = vpop.eup %2410  ;;  %v1863_v41 = vadd.f32 1.0, %v2409_v27 }
 0x1b7   : > { %v2413_v40 = vpop.eup %2412  ;;  %v1864_v46 = vadd.f32 1.0, %v2411_v17 }
 0x1b8   : > { %v2415_v52 = vpop.eup %2414  ;;  %v1865_v62 = vadd.f32 1.0, %v2413_v40  ;;  %2416 = vrcp.f32 %v1863_v41 }
 0x1b9   : > { %v1866_v58 = vadd.f32 1.0, %v2415_v52  ;;  %2418 = vrcp.f32 %v1864_v46 }
 0x1ba   : > { %2420 = vrcp.f32 %v1865_v62 }
 0x1bb   : > { %2422 = vrcp.f32 %v1866_v58 }
 0x1c2   : > { %v2417_v5 = vpop.eup %2416 }
 0x1c3   : > { %v2419_v43 = vpop.eup %2418 }
 0x1c4   : > { %v2421_v7 = vpop.eup %2420  ;;  %v1875_v8 = vcombine.low %v2417_v5, %v2419_v43 }
 0x1c5   : > { %v2423_v63 = vpop.eup %2422 }
 0x1c6   : > { %v1876_v14 = vcombine.low %v2421_v7, %v2423_v63  ;;  %v1883_v16 = vrot.slane %v1875_v8, %v1882_v9 }
 0x1c8   : > { %v1890_v19 = vrot.slane %v1876_v14, %v1882_v9 }
 0x1ca   : > { %v1891_v11 = vcombine.low %v1883_v16, %v1890_v19 }
 0x1cc   : > { %v1898_v53 = vrot.slane %v1891_v11, %v1882_v9 }
 0x1ce   : > { %1904 = vst.msk [vmem:[%s358_s12] sm:$0xf] %vm1902_vm0, %v1898_v53 }
 0x1cf   : > { %2544 = shalt.err (!%p2541_p3)
}
 0x1d0   : > { %s2545_s16 = scalar_lea.hbm %s3503_s6, 64  ;;  %s2549_s13 = scalar_lea.hbm %s3554_s7, 128 }
 0x1d1   : > { %p2546_p6 = scmp.ne.s32.totalorder %s3503_s6, %s2545_s16  ;;  %p2550_p12 = scmp.lt.u32.totalorder %s3503_s6, %s3554_s7 }
 0x1d2   : > { %p2551_p13 = scmp.lt.u32.totalorder %s2549_s13, %s2545_s16  ;;  %p2553_p8 = scmp.lt.u32.totalorder %s2545_s16, %s3503_s6 }
 0x1d3   : > { %p2547_p4 = pnand %p2546_p6, %p3574_p0 }
 0x1d4   : > { %p2552_p10 = por %p2551_p13, %p2550_p12 }
 0x1d5   : > { %p2548_p11 = pneg %p2547_p4 }
 0x1d6   : > { %p2554_p2 = por %p2553_p8, %p2552_p10 }
 0x1d8   : > { %p2555_p5 = pnand %p2554_p2, %p2548_p11 }
 0x1da   : > { %2558 = shalt.err (!%p2555_p5)
}
 0x1db   : > { %2172 = dma.vmem_to_hbm [thread:$0]  (%p3574_p0), %s3505_s19, 64, %s3503_s6, %s1906_s15  }
 0x1dc PF: > { %s1932_s12 = sand.u32 1, %s2601_s26   ;;  %p3575_p9 = scmp.ne.s32.totalorder %s3563_s14, 0 }
 0x1dd   : > { %p3576_p1 = scmp.ge.s32.totalorder %s2613_s29, 2  ;;  %s1933_s23 = scalar_lea.sflag [#allocation5], %s1932_s12 }
 0x1df   : > { %p2195_p7 = pnand %p3576_p1, %p3575_p9 }
 0x1e1   : > { %2596 = dma.done.wait (!%p2195_p7), %s1933_s23, 64  }
 0x1e2   : > { %2598 = vsyncadd (!%p2195_p7), %s1933_s23, 4294967232  ;;  %p25_p3 = scmp.ge.s32.totalorder %s2778_s22, 4   ;;  %s3577_s26 = smov %s2605_s27 }
 0x1e3   : > { %s3578_s27 = smov %s2609_s28  ;;  %s3579_s28 = smov %s2790_s30 }
 0x1e4   : > { %s3580_s29 = smov %s2778_s22  ;;  %27 = sbr.rel (!%p25_p3) target bundleno = 11 (0xb), region = 115 }
 0x1eb   :  { %1938 = vsyncpa [#allocation4], 1 }
 0x1ec   :  { %1940 = vsyncpa [#allocation4 + $0x1], 1 }
 0x1ed   :  { %1941 = vsyncpa [#allocation5], 1 }
 0x1ee   :  { %1943 = vsyncpa [#allocation5 + $0x1], 1 }
 0x1ef   :  { %1944 = vsyncpa [#allocation6], 1 }
 0x1f0   :  { %1946 = vsyncpa [#allocation6 + $0x1], 1 }
 0x1f1   :  { %1947 = vsyncpa [#allocation7], 1 }
 0x1f2   :  { %1949 = vsyncpa [#allocation7 + $0x1], 1 }
 0x1f3   :  { %1950 = vsyncpa [#allocation11], 1 }
 0x1f4   :  { %1951 = vsyncpa [#allocation14], 1 }

</bundles_post_ra>
